<compile_context>
chip_gen: v7x
topology: tpu7x:2x2x1
jax: 0.10.0
libtpu: 0.0.40
codegen_flags: <defaults>
</compile_context>

<pallas_src>
import jax
import jax.numpy as jnp
from jax.experimental import pallas as pl
from jax.experimental.pallas import tpu as pltpu

# true model dims (from the PyTorch module)
IN_DIM = 784
HID_DIM = 500
LAT_DIM = 20

# lane-aligned padded dims for the hidden/latent axes
HID_P = 512          # 4 * 128
LAT_P = 128          # 1 * 128
ML_P = 2 * LAT_P     # fused mean||logvar head width (256)

DEFAULT_TB = 512     # batch tile (multiple of 16); VMEM-safe on v5e/v6e/v7x


def _round_up(x, m):
    return ((x + m - 1) // m) * m


def _pad2d(a, rows, cols):
    r, c = a.shape
    return jnp.pad(a, ((0, rows - r), (0, cols - c)))


# ---------------------------------------------------------------------------
# kernel
# ---------------------------------------------------------------------------
def vae_kernel(x_ref, eps_ref,
               w1_ref, b1_ref,
               wml_ref, bml_ref,
               wd1_ref, bd1_ref,
               wdo_ref, bdo_ref,
               xout_ref, mean_ref, logvar_ref):
    # x arrives f32 at true width 784; cast to bf16 in-kernel (VPU) for the MXU.
    x = x_ref[...].astype(jnp.bfloat16)       # (TB, 784) bf16
    eps = eps_ref[...]                        # (TB, LAT_P) f32

    # ---- encoder layer 1 (bf16 MXU, f32 accumulate + elementwise) ----
    h = jnp.dot(x, w1_ref[...], preferred_element_type=jnp.float32) + b1_ref[...]
    h = jnp.maximum(h, 0.0)                                   # relu (f32)

    # ---- fused mean/logvar head: one matmul, split on (128-aligned) lanes ----
    ml = jnp.dot(h.astype(jnp.bfloat16), wml_ref[...],
                 preferred_element_type=jnp.float32) + bml_ref[...]
    mean = ml[:, :LAT_P]
    logvar = ml[:, LAT_P:]

    # ---- reparameterization: z = mu + exp(0.5*logvar) * eps (f32) ----
    z = mean + jnp.exp(logvar * 0.5) * eps

    # ---- decoder ----
    hd = jnp.dot(z.astype(jnp.bfloat16), wd1_ref[...],
                 preferred_element_type=jnp.float32) + bd1_ref[...]
    hd = jnp.maximum(hd, 0.0)                                 # relu (f32)

    logits = jnp.dot(hd.astype(jnp.bfloat16), wdo_ref[...],
                     preferred_element_type=jnp.float32) + bdo_ref[...]

    # f32 sigmoid, bf16 writeback (halves the largest HBM stream)
    xout_ref[...] = jax.nn.sigmoid(logits).astype(jnp.bfloat16)
    mean_ref[...] = mean
    logvar_ref[...] = logvar


# ---------------------------------------------------------------------------
# parameter preparation (hoisted out of the per-call path)
# ---------------------------------------------------------------------------
def prepare_params(params):
    """Pad + cast parameters once.

    Weights stored (in_features, out_features), zero-padded only where the
    kernel needs lane/sublane-aligned sizes, cast to bf16 for the MXU; biases
    stay f32 (added after the f32-accumulating matmul). mean/logvar heads are
    fused column-wise. The 784-sized axes are kept at their true size so x and
    x_out never need a wrapper-side column pad/slice."""
    (w1, b1, wm, bm, wl, bl, wd1, bd1, wdo, bdo) = params

    w1_p = _pad2d(w1, IN_DIM, HID_P).astype(jnp.bfloat16)          # (784, 512)
    b1_p = _pad2d(b1.reshape(1, -1), 1, HID_P).astype(jnp.float32)

    wml_p = jnp.concatenate(
        [_pad2d(wm, HID_P, LAT_P), _pad2d(wl, HID_P, LAT_P)], axis=1
    ).astype(jnp.bfloat16)                                         # (512, 256)
    bml_p = jnp.concatenate(
        [_pad2d(bm.reshape(1, -1), 1, LAT_P),
         _pad2d(bl.reshape(1, -1), 1, LAT_P)], axis=1).astype(jnp.float32)

    wd1_p = _pad2d(wd1, LAT_P, HID_P).astype(jnp.bfloat16)         # (128, 512)
    bd1_p = _pad2d(bd1.reshape(1, -1), 1, HID_P).astype(jnp.float32)
    wdo_p = _pad2d(wdo, HID_P, IN_DIM).astype(jnp.bfloat16)        # (512, 784)
    bdo_p = bdo.reshape(1, -1).astype(jnp.float32)                 # (1, 784)

    return (w1_p, b1_p, wml_p, bml_p, wd1_p, bd1_p, wdo_p, bdo_p)


# ---------------------------------------------------------------------------
# forward wrapper
# ---------------------------------------------------------------------------
def vae_forward(x_in, eps, padded_params, *, tb=DEFAULT_TB):
    """x_in: (B,1,28,28) or (B,784) f32; eps: (B, LAT_DIM) f32;
    padded_params: prepare_params(...). Returns (x_out bf16 (B,1,28,28),
    z_mean f32 (B,20), z_logvar f32 (B,20))."""
    x_flat = x_in.reshape(-1, IN_DIM)          # == x.view(-1, 784); metadata only
    if x_flat.dtype != jnp.float32:
        x_flat = x_flat.astype(jnp.float32)
    B = x_flat.shape[0]

    # Batch tile: multiple of 16 (bf16 sublane tile), capped at tb, and chosen
    # so any B > 16 produces >= 2 grid steps (v7x megacore gets both TCs busy).
    tb = max(16, _round_up(tb, 16))
    TB = min(tb, max(16, _round_up(pl.cdiv(B, 2), 16)))
    Bp = _round_up(B, TB)
    n_tiles = Bp // TB

    # Rows-only pad, and only when B is ragged w.r.t. TB (the common aligned
    # path does zero wrapper-side copies of x).
    if Bp != B:
        x_flat = jnp.pad(x_flat, ((0, Bp - B), (0, 0)))
    eps_p = _pad2d(eps.astype(jnp.float32), Bp, LAT_P)   # tiny (B x 20 -> Bp x 128)

    (w1_p, b1_p, wml_p, bml_p, wd1_p, bd1_p, wdo_p, bdo_p) = padded_params

    x_spec = pl.BlockSpec((TB, IN_DIM), lambda i: (i, 0))    # streamed per step
    lat_spec = pl.BlockSpec((TB, LAT_P), lambda i: (i, 0))

    def resident(shape):
        # full-array block with constant index_map -> stays resident in VMEM
        return pl.BlockSpec(shape, lambda i: (0, 0))

    # advisory cost estimate (helps XLA schedule neighbors of this short kernel)
    mac_cols = IN_DIM * HID_P + HID_P * ML_P + LAT_P * HID_P + HID_P * IN_DIM
    cost = pl.CostEstimate(
        flops=2 * Bp * mac_cols,
        transcendentals=Bp * (LAT_P + IN_DIM),               # exp + sigmoid
        bytes_accessed=(Bp * IN_DIM * 4 + Bp * LAT_P * 4     # x, eps in
                        + Bp * IN_DIM * 2                    # x_out (bf16)
                        + 2 * Bp * LAT_P * 4                 # mean, logvar
                        + 2 * mac_cols                       # bf16 weights
                        + 4 * (HID_P + ML_P + HID_P + IN_DIM)),  # f32 biases
    )

    x_out_p, mean_p, logvar_p = pl.pallas_call(
        vae_kernel,
        out_shape=(
            jax.ShapeDtypeStruct((Bp, IN_DIM), jnp.bfloat16),
            jax.ShapeDtypeStruct((Bp, LAT_P), jnp.float32),
            jax.ShapeDtypeStruct((Bp, LAT_P), jnp.float32),
        ),
        grid=(n_tiles,),
        in_specs=[
            x_spec,                          # x (f32, true width 784)
            lat_spec,                        # eps
            resident((IN_DIM, HID_P)),       # w1
            resident((1, HID_P)),            # b1
            resident((HID_P, ML_P)),         # wm || wl (fused)
            resident((1, ML_P)),             # bm || bl (fused)
            resident((LAT_P, HID_P)),        # wd1
            resident((1, HID_P)),            # bd1
            resident((HID_P, IN_DIM)),       # wdo
            resident((1, IN_DIM)),           # bdo
        ],
        out_specs=(x_spec, lat_spec, lat_spec),
        compiler_params=pltpu.CompilerParams(
            dimension_semantics=("parallel",)),               # megacore on v7x
        cost_estimate=cost,
    )(x_flat, eps_p, w1_p, b1_p, wml_p, bml_p, wd1_p, bd1_p, wdo_p, bdo_p)

    # rows-only slices; no-ops when B is a multiple of TB
    x_out_rows = x_out_p if Bp == B else x_out_p[:B]
    x_out = x_out_rows.reshape(-1, 1, 28, 28)                 # bf16, == view(-1,1,28,28)
    z_mean = mean_p[:B, :LAT_DIM]
    z_logvar = logvar_p[:B, :LAT_DIM]
    return x_out, z_mean, z_logvar


# ---------------------------------------------------------------------------
# params + pure-JAX reference (torch.nn.Linear-style init, weights (in, out))
# ---------------------------------------------------------------------------
def init_params(key):
    def linear(key, fan_in, fan_out):
        kw, kb = jax.random.split(key)
        bound = 1.0 / jnp.sqrt(fan_in)
        w = jax.random.uniform(kw, (fan_in, fan_out), jnp.float32, -bound, bound)
        b = jax.random.uniform(kb, (fan_out,), jnp.float32, -bound, bound)
        return w, b

    keys = jax.random.split(key, 5)
    w1, b1 = linear(keys[0], IN_DIM, HID_DIM)      # encoder_l1
    wm, bm = linear(keys[1], HID_DIM, LAT_DIM)     # encoder_mean
    wl, bl = linear(keys[2], HID_DIM, LAT_DIM)     # encoder_logvar
    wd1, bd1 = linear(keys[3], LAT_DIM, HID_DIM)   # decoder_l1
    wdo, bdo = linear(keys[4], HID_DIM, IN_DIM)    # decoder_output
    return (w1, b1, wm, bm, wl, bl, wd1, bd1, wdo, bdo)


def vae_reference(x_in, eps, params):
    """Pure-JAX f32 reference matching the PyTorch forward semantics."""
    (w1, b1, wm, bm, wl, bl, wd1, bd1, wdo, bdo) = params
    x = x_in.reshape(-1, IN_DIM)
    h = jax.nn.relu(x @ w1 + b1)
    mean = h @ wm + bm
    logvar = h @ wl + bl
    z = mean + jnp.exp(0.5 * logvar) * eps
    hd = jax.nn.relu(z @ wd1 + bd1)
    x_out = jax.nn.sigmoid(hd @ wdo + bdo).reshape(-1, 1, 28, 28)
    return x_out, mean, logvar


if __name__ == "__main__":
    key = jax.random.PRNGKey(0)
    k_param, k_x, k_eps = jax.random.split(key, 3)

    params = init_params(k_param)
    padded = prepare_params(params)   # padded + bf16-cast once, reused across calls

    # --- small batch: single 16-row tile, ragged rows ---
    B = 2
    x = jax.random.uniform(k_x, (B, 1, 28, 28), jnp.float32)   # MNIST-like input
    eps = jax.random.normal(k_eps, (B, LAT_DIM), jnp.float32)  # == torch.normal(0,1)
    x_out, z_mean, z_logvar = jax.block_until_ready(vae_forward(x, eps, padded))

    x_ref, m_ref, lv_ref = vae_reference(x, eps, params)
    assert x_out.shape == (B, 1, 28, 28) and x_out.dtype == jnp.bfloat16
    assert z_mean.shape == (B, LAT_DIM) and z_logvar.shape == (B, LAT_DIM)
    # bf16 MXU operands + bf16 x_out writeback -> relaxed tolerance vs f32 ref
    assert jnp.allclose(x_out.astype(jnp.float32), x_ref, atol=2e-2)
    assert jnp.allclose(z_mean, m_ref, atol=1e-2)
    assert jnp.allclose(z_logvar, lv_ref, atol=1e-2)

    # --- ragged multi-tile batch: TB=32, Bp=64, 2 pipelined grid steps ---
    B2 = 40
    x2 = jax.random.uniform(jax.random.PRNGKey(1), (B2, 1, 28, 28), jnp.float32)
    eps2 = jax.random.normal(jax.random.PRNGKey(2), (B2, LAT_DIM), jnp.float32)
    x_out2, m2, lv2 = jax.block_until_ready(vae_forward(x2, eps2, padded))
    x_ref2, m_ref2, lv_ref2 = vae_reference(x2, eps2, params)
    assert jnp.allclose(x_out2.astype(jnp.float32), x_ref2, atol=2e-2)
    assert jnp.allclose(m2, m_ref2, atol=1e-2)
    assert jnp.allclose(lv2, lv_ref2, atol=1e-2)

    # --- exactly-dividing batch: TB=32, 2 grid steps, zero wrapper copies of x ---
    B3 = 64
    x3 = jax.random.uniform(jax.random.PRNGKey(3), (B3, 1, 28, 28), jnp.float32)
    eps3 = jax.random.normal(jax.random.PRNGKey(4), (B3, LAT_DIM), jnp.float32)
    x_out3, m3, lv3 = jax.block_until_ready(vae_forward(x3, eps3, padded))
    x_ref3, m_ref3, lv_ref3 = vae_reference(x3, eps3, params)
    assert jnp.allclose(x_out3.astype(jnp.float32), x_ref3, atol=2e-2)
    assert jnp.allclose(m3, m_ref3, atol=1e-2)
    assert jnp.allclose(lv3, lv_ref3, atol=1e-2)

    print("KERNEL_OK")
</pallas_src>

<mosaic_0001>
module attributes {stable_mosaic.version = 11 : i64} {
  func.func @vae_kernel(%arg0: i32, %arg1: memref<16x784xf32, #tpu.memory_space<vmem>>, %arg2: memref<16x128xf32, #tpu.memory_space<vmem>>, %arg3: memref<784x512xbf16, #tpu.memory_space<vmem>>, %arg4: memref<1x512xf32, #tpu.memory_space<vmem>>, %arg5: memref<512x256xbf16, #tpu.memory_space<vmem>>, %arg6: memref<1x256xf32, #tpu.memory_space<vmem>>, %arg7: memref<128x512xbf16, #tpu.memory_space<vmem>>, %arg8: memref<1x512xf32, #tpu.memory_space<vmem>>, %arg9: memref<512x784xbf16, #tpu.memory_space<vmem>>, %arg10: memref<1x784xf32, #tpu.memory_space<vmem>>, %arg11: memref<16x784xbf16, #tpu.memory_space<vmem>>, %arg12: memref<16x128xf32, #tpu.memory_space<vmem>>, %arg13: memref<16x128xf32, #tpu.memory_space<vmem>>) attributes {dimension_semantics = [#tpu.dimension_semantics<parallel>], iteration_bounds = array<i64: 1>, scalar_prefetch = 0 : i64, scratch_operands = 0 : i64, tpu.core_type = #tpu.core_type<tc>, window_params = [{transform_indices = @transform_0, window_bounds = array<i64: 16, 784>}, {transform_indices = @transform_1, window_bounds = array<i64: 16, 128>}, {pipeline_mode = #tpu.pipeline_mode<synchronous>, transform_indices = @transform_2, window_bounds = array<i64: 784, 512>}, {pipeline_mode = #tpu.pipeline_mode<synchronous>, transform_indices = @transform_3, window_bounds = array<i64: 1, 512>}, {pipeline_mode = #tpu.pipeline_mode<synchronous>, transform_indices = @transform_4, window_bounds = array<i64: 512, 256>}, {pipeline_mode = #tpu.pipeline_mode<synchronous>, transform_indices = @transform_5, window_bounds = array<i64: 1, 256>}, {pipeline_mode = #tpu.pipeline_mode<synchronous>, transform_indices = @transform_6, window_bounds = array<i64: 128, 512>}, {pipeline_mode = #tpu.pipeline_mode<synchronous>, transform_indices = @transform_7, window_bounds = array<i64: 1, 512>}, {pipeline_mode = #tpu.pipeline_mode<synchronous>, transform_indices = @transform_8, window_bounds = array<i64: 512, 784>}, {pipeline_mode = #tpu.pipeline_mode<synchronous>, transform_indices = @transform_9, window_bounds = array<i64: 1, 784>}, {transform_indices = @transform_10, window_bounds = array<i64: 16, 784>}, {transform_indices = @transform_11, window_bounds = array<i64: 16, 128>}, {transform_indices = @transform_12, window_bounds = array<i64: 16, 128>}]} {
    %c0 = arith.constant 0 : index
    %c0_0 = arith.constant 0 : index
    %0 = vector.load %arg1[%c0, %c0_0] : memref<16x784xf32, #tpu.memory_space<vmem>>, vector<16x784xf32>
    %1 = arith.truncf %0 : vector<16x784xf32> to vector<16x784xbf16>
    %c0_1 = arith.constant 0 : index
    %c0_2 = arith.constant 0 : index
    %2 = vector.load %arg2[%c0_1, %c0_2] : memref<16x128xf32, #tpu.memory_space<vmem>>, vector<16x128xf32>
    %c0_3 = arith.constant 0 : index
    %c0_4 = arith.constant 0 : index
    %3 = vector.load %arg3[%c0_3, %c0_4] : memref<784x512xbf16, #tpu.memory_space<vmem>>, vector<784x512xbf16>
    %cst = arith.constant dense<0.000000e+00> : vector<16x512xf32>
    %4 = tpu.matmul %1, %3, %cst {dimension_numbers = #tpu.dot_dimension_numbers<[1], [0], [0], [1], [0, 0, 1, 1], [], []>} : vector<16x784xbf16>, vector<784x512xbf16>, vector<16x512xf32> -> vector<16x512xf32>
    %c0_5 = arith.constant 0 : index
    %c0_6 = arith.constant 0 : index
    %5 = vector.load %arg4[%c0_5, %c0_6] : memref<1x512xf32, #tpu.memory_space<vmem>>, vector<1x512xf32>
    %6 = vector.broadcast %5 : vector<1x512xf32> to vector<16x512xf32>
    %7 = arith.addf %4, %6 : vector<16x512xf32>
    %cst_7 = arith.constant 0.000000e+00 : f32
    %8 = vector.broadcast %cst_7 : f32 to vector<16x512xf32>
    %9 = arith.maximumf %7, %8 : vector<16x512xf32>
    %10 = arith.truncf %9 : vector<16x512xf32> to vector<16x512xbf16>
    %c0_8 = arith.constant 0 : index
    %c0_9 = arith.constant 0 : index
    %11 = vector.load %arg5[%c0_8, %c0_9] : memref<512x256xbf16, #tpu.memory_space<vmem>>, vector<512x256xbf16>
    %cst_10 = arith.constant dense<0.000000e+00> : vector<16x256xf32>
    %12 = tpu.matmul %10, %11, %cst_10 {dimension_numbers = #tpu.dot_dimension_numbers<[1], [0], [0], [1], [0, 0, 1, 1], [], []>} : vector<16x512xbf16>, vector<512x256xbf16>, vector<16x256xf32> -> vector<16x256xf32>
    %c0_11 = arith.constant 0 : index
    %c0_12 = arith.constant 0 : index
    %13 = vector.load %arg6[%c0_11, %c0_12] : memref<1x256xf32, #tpu.memory_space<vmem>>, vector<1x256xf32>
    %14 = vector.broadcast %13 : vector<1x256xf32> to vector<16x256xf32>
    %15 = arith.addf %12, %14 : vector<16x256xf32>
    %16 = vector.extract_strided_slice %15 {offsets = [0, 0], sizes = [16, 128], strides = [1, 1]} : vector<16x256xf32> to vector<16x128xf32>
    %17 = vector.extract_strided_slice %15 {offsets = [0, 128], sizes = [16, 128], strides = [1, 1]} : vector<16x256xf32> to vector<16x128xf32>
    %cst_13 = arith.constant 5.000000e-01 : f32
    %18 = vector.broadcast %cst_13 : f32 to vector<16x128xf32>
    %19 = arith.mulf %17, %18 : vector<16x128xf32>
    %20 = math.exp %19 : vector<16x128xf32>
    %21 = arith.mulf %20, %2 : vector<16x128xf32>
    %22 = arith.addf %16, %21 : vector<16x128xf32>
    %23 = arith.truncf %22 : vector<16x128xf32> to vector<16x128xbf16>
    %c0_14 = arith.constant 0 : index
    %c0_15 = arith.constant 0 : index
    %24 = vector.load %arg7[%c0_14, %c0_15] : memref<128x512xbf16, #tpu.memory_space<vmem>>, vector<128x512xbf16>
    %cst_16 = arith.constant dense<0.000000e+00> : vector<16x512xf32>
    %25 = tpu.matmul %23, %24, %cst_16 {dimension_numbers = #tpu.dot_dimension_numbers<[1], [0], [0], [1], [0, 0, 1, 1], [], []>} : vector<16x128xbf16>, vector<128x512xbf16>, vector<16x512xf32> -> vector<16x512xf32>
    %c0_17 = arith.constant 0 : index
    %c0_18 = arith.constant 0 : index
    %26 = vector.load %arg8[%c0_17, %c0_18] : memref<1x512xf32, #tpu.memory_space<vmem>>, vector<1x512xf32>
    %27 = vector.broadcast %26 : vector<1x512xf32> to vector<16x512xf32>
    %28 = arith.addf %25, %27 : vector<16x512xf32>
    %cst_19 = arith.constant 0.000000e+00 : f32
    %29 = vector.broadcast %cst_19 : f32 to vector<16x512xf32>
    %30 = arith.maximumf %28, %29 : vector<16x512xf32>
    %31 = arith.truncf %30 : vector<16x512xf32> to vector<16x512xbf16>
    %c0_20 = arith.constant 0 : index
    %c0_21 = arith.constant 0 : index
    %32 = vector.load %arg9[%c0_20, %c0_21] : memref<512x784xbf16, #tpu.memory_space<vmem>>, vector<512x784xbf16>
    %cst_22 = arith.constant dense<0.000000e+00> : vector<16x784xf32>
    %33 = tpu.matmul %31, %32, %cst_22 {dimension_numbers = #tpu.dot_dimension_numbers<[1], [0], [0], [1], [0, 0, 1, 1], [], []>} : vector<16x512xbf16>, vector<512x784xbf16>, vector<16x784xf32> -> vector<16x784xf32>
    %c0_23 = arith.constant 0 : index
    %c0_24 = arith.constant 0 : index
    %34 = vector.load %arg10[%c0_23, %c0_24] : memref<1x784xf32, #tpu.memory_space<vmem>>, vector<1x784xf32>
    %35 = vector.broadcast %34 : vector<1x784xf32> to vector<16x784xf32>
    %36 = arith.addf %33, %35 : vector<16x784xf32>
    %37 = arith.negf %36 : vector<16x784xf32>
    %38 = math.exp %37 : vector<16x784xf32>
    %cst_25 = arith.constant 1.000000e+00 : f32
    %39 = vector.broadcast %cst_25 : f32 to vector<16x784xf32>
    %40 = arith.addf %39, %38 : vector<16x784xf32>
    %41 = arith.divf %39, %40 : vector<16x784xf32>
    %42 = arith.truncf %41 : vector<16x784xf32> to vector<16x784xbf16>
    %c0_26 = arith.constant 0 : index
    %c0_27 = arith.constant 0 : index
    %43 = vector.load %arg11[%c0_26, %c0_27] : memref<16x784xbf16, #tpu.memory_space<vmem>>, vector<16x784xbf16>
    tpu.vector_store %arg11[%c0_26, %c0_27], %42 {strides = array<i32>} : memref<16x784xbf16, #tpu.memory_space<vmem>>, vector<16x784xbf16>,
    %c0_28 = arith.constant 0 : index
    %c0_29 = arith.constant 0 : index
    %44 = vector.load %arg12[%c0_28, %c0_29] : memref<16x128xf32, #tpu.memory_space<vmem>>, vector<16x128xf32>
    tpu.vector_store %arg12[%c0_28, %c0_29], %16 {strides = array<i32>} : memref<16x128xf32, #tpu.memory_space<vmem>>, vector<16x128xf32>,
    %c0_30 = arith.constant 0 : index
    %c0_31 = arith.constant 0 : index
    %45 = vector.load %arg13[%c0_30, %c0_31] : memref<16x128xf32, #tpu.memory_space<vmem>>, vector<16x128xf32>
    tpu.vector_store %arg13[%c0_30, %c0_31], %17 {strides = array<i32>} : memref<16x128xf32, #tpu.memory_space<vmem>>, vector<16x128xf32>,
    return
  }
  func.func @transform_0(%arg0: i32) -> (i32, i32) {
    %c0_i32 = arith.constant 0 : i32
    %c0_i32_0 = arith.constant 0 : i32
    return %arg0, %c0_i32 : i32, i32
  }
  func.func @transform_1(%arg0: i32) -> (i32, i32) {
    %c0_i32 = arith.constant 0 : i32
    %c0_i32_0 = arith.constant 0 : i32
    return %arg0, %c0_i32 : i32, i32
  }
  func.func @transform_2(%arg0: i32) -> (i32, i32) {
    %c0_i32 = arith.constant 0 : i32
    %c0_i32_0 = arith.constant 0 : i32
    %c0_i32_1 = arith.constant 0 : i32
    return %c0_i32, %c0_i32_0 : i32, i32
  }
  func.func @transform_3(%arg0: i32) -> (i32, i32) {
    %c0_i32 = arith.constant 0 : i32
    %c0_i32_0 = arith.constant 0 : i32
    %c0_i32_1 = arith.constant 0 : i32
    return %c0_i32, %c0_i32_0 : i32, i32
  }
  func.func @transform_4(%arg0: i32) -> (i32, i32) {
    %c0_i32 = arith.constant 0 : i32
    %c0_i32_0 = arith.constant 0 : i32
    %c0_i32_1 = arith.constant 0 : i32
    return %c0_i32, %c0_i32_0 : i32, i32
  }
  func.func @transform_5(%arg0: i32) -> (i32, i32) {
    %c0_i32 = arith.constant 0 : i32
    %c0_i32_0 = arith.constant 0 : i32
    %c0_i32_1 = arith.constant 0 : i32
    return %c0_i32, %c0_i32_0 : i32, i32
  }
  func.func @transform_6(%arg0: i32) -> (i32, i32) {
    %c0_i32 = arith.constant 0 : i32
    %c0_i32_0 = arith.constant 0 : i32
    %c0_i32_1 = arith.constant 0 : i32
    return %c0_i32, %c0_i32_0 : i32, i32
  }
  func.func @transform_7(%arg0: i32) -> (i32, i32) {
    %c0_i32 = arith.constant 0 : i32
    %c0_i32_0 = arith.constant 0 : i32
    %c0_i32_1 = arith.constant 0 : i32
    return %c0_i32, %c0_i32_0 : i32, i32
  }
  func.func @transform_8(%arg0: i32) -> (i32, i32) {
    %c0_i32 = arith.constant 0 : i32
    %c0_i32_0 = arith.constant 0 : i32
    %c0_i32_1 = arith.constant 0 : i32
    return %c0_i32, %c0_i32_0 : i32, i32
  }
  func.func @transform_9(%arg0: i32) -> (i32, i32) {
    %c0_i32 = arith.constant 0 : i32
    %c0_i32_0 = arith.constant 0 : i32
    %c0_i32_1 = arith.constant 0 : i32
    return %c0_i32, %c0_i32_0 : i32, i32
  }
  func.func @transform_10(%arg0: i32) -> (i32, i32) {
    %c0_i32 = arith.constant 0 : i32
    %c0_i32_0 = arith.constant 0 : i32
    return %arg0, %c0_i32 : i32, i32
  }
  func.func @transform_11(%arg0: i32) -> (i32, i32) {
    %c0_i32 = arith.constant 0 : i32
    %c0_i32_0 = arith.constant 0 : i32
    return %arg0, %c0_i32 : i32, i32
  }
  func.func @transform_12(%arg0: i32) -> (i32, i32) {
    %c0_i32 = arith.constant 0 : i32
    %c0_i32_0 = arith.constant 0 : i32
    return %arg0, %c0_i32 : i32, i32
  }
}

</mosaic_0001>

<bundles_post_ra>
// kernel: tpu_custom_call.1
= control target key start
LH: loop header
LB: loop body
LE: loop exit
PB: predicated region body
PF: predicated region fallthrough
CT: control target
= control target key end

     0   :  { %18 = vsyncpa [#allocation3], 0  ;;  %vm1262_vm0 = vcmask 130048   ;;  %s7746_s0 = inlined_call_operand.vmem [shape: f32[16,784], index: 0, kind: input, shape index: {}]   ;;  %s7747_s1 = inlined_call_operand.vmem [shape: f32[16,128], index: 1, kind: input, shape index: {}]   ;;  %s7748_s2 = inlined_call_operand.vmem [shape: bf16[784,512], index: 2, kind: input, shape index: {}]   ;;  %s7749_s3 = inlined_call_operand.vmem [shape: f32[1,512], index: 3, kind: input, shape index: {}]   ;;  %s7750_s4 = inlined_call_operand.vmem [shape: bf16[512,256], index: 4, kind: input, shape index: {}]   ;;  %s7751_s5 = inlined_call_operand.vmem [shape: f32[1,256], index: 5, kind: input, shape index: {}]   ;;  %s7752_s6 = inlined_call_operand.vmem [shape: bf16[128,512], index: 6, kind: input, shape index: {}]   ;;  %s7753_s7 = inlined_call_operand.vmem [shape: f32[1,512], index: 7, kind: input, shape index: {}]   ;;  %s7754_s8 = inlined_call_operand.vmem [shape: bf16[512,784], index: 8, kind: input, shape index: {}]   ;;  %s7755_s9 = inlined_call_operand.vmem [shape: f32[1,784], index: 9, kind: input, shape index: {}]   ;;  %s7756_s10 = inlined_call_operand.hbm [shape: bf16[16,784], index: 10, kind: output, shape index: {0}]   ;;  %s7757_s11 = inlined_call_operand.hbm [shape: f32[16,128], index: 11, kind: output, shape index: {1}]   ;;  %s7758_s12 = inlined_call_operand.hbm [shape: f32[16,128], index: 12, kind: output, shape index: {2}]  }
   0x1   :  { %v5064_v0 = vld [vmem:[%s7748_s2 + $0x4] ss:$16 sps:$4 sm:$0xff]   ;;  %v5066_v1 = vld [vmem:[%s7748_s2 + $0xc] ss:$16 sps:$4 sm:$0xff]   ;;  %v5068_v2 = vld [vmem:[%s7748_s2] ss:$16 sps:$4 sm:$0xff]  }
   0x2   :  { %1266 = vmatprep.subr.bf16.mxu0 %v5064_v0  ;;  %v5069_v3 = vld [vmem:[%s7748_s2 + $0x8] ss:$16 sps:$4 sm:$0xff]   ;;  %1438 = vmatprep.subr.bf16.mxu1 %v5066_v1  ;;  %v5070_v4 = vld [vmem:[%s7748_s2 + $0x24] ss:$16 sps:$4 sm:$0xff]   ;;  %v5072_v5 = vld [vmem:[%s7748_s2 + $0x2c] ss:$16 sps:$4 sm:$0xff]  }
   0x3   :  { %1267 = vmatpush1.bf16.msra.mxu0 %v5068_v2  ;;  %1439 = vmatpush1.bf16.msra.mxu1 %v5069_v3  ;;  %v5074_v6 = vld [vmem:[%s7748_s2 + $0x20] ss:$16 sps:$4 sm:$0xff]   ;;  %v5075_v7 = vld [vmem:[%s7748_s2 + $0x28] ss:$16 sps:$4 sm:$0xff]   ;;  %v5076_v8 = vld [vmem:[%s7748_s2 + $0x44] ss:$16 sps:$4 sm:$0xff]  }
   0x4   :  { %1268 = vmatprep.subr.bf16.mxu0 %v5070_v4  ;;  %1440 = vmatprep.subr.bf16.mxu1 %v5072_v5  ;;  %v5078_v9 = vld [vmem:[%s7748_s2 + $0x4c] ss:$16 sps:$4 sm:$0xff]   ;;  %v5080_v10 = vld [vmem:[%s7748_s2 + $0x40] ss:$16 sps:$4 sm:$0xff]   ;;  %v5081_v11 = vld [vmem:[%s7748_s2 + $0x48] ss:$16 sps:$4 sm:$0xff]  }
   0x5   :  { %v5082_v12 = vld [vmem:[%s7748_s2 + $0x64] ss:$16 sps:$4 sm:$0xff]   ;;  %v5084_v13 = vld [vmem:[%s7748_s2 + $0x6c] ss:$16 sps:$4 sm:$0xff]   ;;  %v5086_v14 = vld [vmem:[%s7748_s2 + $0x60] ss:$16 sps:$4 sm:$0xff]  }
   0x6   :  { %v5087_v15 = vld [vmem:[%s7748_s2 + $0x68] ss:$16 sps:$4 sm:$0xff]   ;;  %v5088_v16 = vld [vmem:[%s7748_s2 + $0x84] ss:$16 sps:$4 sm:$0xff]   ;;  %v5090_v17 = vld [vmem:[%s7748_s2 + $0x8c] ss:$16 sps:$4 sm:$0xff]  }
   0x7   :  { %1269 = vmatpush1.bf16.msra.mxu0 %v5074_v6  ;;  %1441 = vmatpush1.bf16.msra.mxu1 %v5075_v7  ;;  %v5092_v18 = vld [vmem:[%s7748_s2 + $0x80] ss:$16 sps:$4 sm:$0xff]   ;;  %v5093_v19 = vld [vmem:[%s7748_s2 + $0x88] ss:$16 sps:$4 sm:$0xff]   ;;  %v5094_v20 = vld [vmem:[%s7748_s2 + $0xa4] ss:$16 sps:$4 sm:$0xff]  }
   0x8   :  { %1270 = vmatprep.subr.bf16.mxu0 %v5076_v8  ;;  %1442 = vmatprep.subr.bf16.mxu1 %v5078_v9  ;;  %v5096_v21 = vld [vmem:[%s7748_s2 + $0xac] ss:$16 sps:$4 sm:$0xff]   ;;  %v5098_v22 = vld [vmem:[%s7748_s2 + $0xa0] ss:$16 sps:$4 sm:$0xff]   ;;  %v5099_v23 = vld [vmem:[%s7748_s2 + $0xa8] ss:$16 sps:$4 sm:$0xff]  }
   0x9   :  { %v5100_v24 = vld [vmem:[%s7748_s2 + $0xc4] ss:$16 sps:$4 sm:$0xff]   ;;  %v5102_v25 = vld [vmem:[%s7748_s2 + $0xcc] ss:$16 sps:$4 sm:$0xff]   ;;  %v5104_v26 = vld [vmem:[%s7748_s2 + $0xc0] ss:$16 sps:$4 sm:$0xff]  }
   0xa   :  { %v5105_v27 = vld [vmem:[%s7748_s2 + $0xc8] ss:$16 sps:$4 sm:$0xff]   ;;  %v5106_v28 = vld [vmem:[%s7748_s2 + $0xe4] ss:$16 sps:$4 sm:$0xff]   ;;  %v5108_v29 = vld [vmem:[%s7748_s2 + $0xec] ss:$16 sps:$4 sm:$0xff]  }
   0xb   :  { %1271 = vmatpush1.bf16.msra.mxu0 %v5080_v10  ;;  %1443 = vmatpush1.bf16.msra.mxu1 %v5081_v11  ;;  %v5110_v30 = vld [vmem:[%s7748_s2 + $0xe0] ss:$16 sps:$4 sm:$0xff]   ;;  %v5111_v31 = vld [vmem:[%s7748_s2 + $0xe8] ss:$16 sps:$4 sm:$0xff]   ;;  %v5112_v32 = vld [vmem:[%s7748_s2 + $0x104] ss:$16 sps:$4 sm:$0xff]  }
   0xc   :  { %1272 = vmatprep.subr.bf16.mxu0 %v5082_v12  ;;  %1444 = vmatprep.subr.bf16.mxu1 %v5084_v13  ;;  %v5114_v33 = vld [vmem:[%s7748_s2 + $0x10c] ss:$16 sps:$4 sm:$0xff]   ;;  %v5116_v34 = vld [vmem:[%s7748_s2 + $0x100] ss:$16 sps:$4 sm:$0xff]   ;;  %v5117_v35 = vld [vmem:[%s7748_s2 + $0x108] ss:$16 sps:$4 sm:$0xff]  }
   0xd   :  { %v5118_v36 = vld [vmem:[%s7748_s2 + $0x124] ss:$16 sps:$4 sm:$0xff]   ;;  %v5120_v37 = vld [vmem:[%s7748_s2 + $0x12c] ss:$16 sps:$4 sm:$0xff]   ;;  %v5122_v38 = vld [vmem:[%s7748_s2 + $0x120] ss:$16 sps:$4 sm:$0xff]  }
   0xe   :  { %v5123_v39 = vld [vmem:[%s7748_s2 + $0x128] ss:$16 sps:$4 sm:$0xff]   ;;  %v5124_v40 = vld [vmem:[%s7748_s2 + $0x144] ss:$16 sps:$4 sm:$0xff]   ;;  %v5126_v41 = vld [vmem:[%s7748_s2 + $0x14c] ss:$16 sps:$4 sm:$0xff]  }
   0xf   :  { %1273 = vmatpush1.bf16.msra.mxu0 %v5086_v14  ;;  %1445 = vmatpush1.bf16.msra.mxu1 %v5087_v15  ;;  %v5128_v42 = vld [vmem:[%s7748_s2 + $0x140] ss:$16 sps:$4 sm:$0xff]   ;;  %v5129_v43 = vld [vmem:[%s7748_s2 + $0x148] ss:$16 sps:$4 sm:$0xff]   ;;  %v5130_v44 = vld [vmem:[%s7748_s2 + $0x164] ss:$16 sps:$4 sm:$0xff]  }
  0x10   :  { %1274 = vmatprep.subr.bf16.mxu0 %v5088_v16  ;;  %1446 = vmatprep.subr.bf16.mxu1 %v5090_v17  ;;  %v5132_v45 = vld [vmem:[%s7748_s2 + $0x16c] ss:$16 sps:$4 sm:$0xff]   ;;  %v49_v47 = vld [vmem:[%s7746_s0 + $0x40] sm:$0xff]  ;;  %v5135_v49 = vld [vmem:[%s7748_s2 + $0x168] ss:$16 sps:$4 sm:$0xff]  }
  0x11   :  { %v42_v46 = vld [vmem:[%s7746_s0 + $0x8] sm:$0xff]  ;;  %v5134_v48 = vld [vmem:[%s7748_s2 + $0x160] ss:$16 sps:$4 sm:$0xff]   ;;  %v5136_v51 = vld [vmem:[%s7748_s2 + $0x184] ss:$16 sps:$4 sm:$0xff]  }
  0x12   :  { %v56_v50 = vpack.c.bf16 %v49_v47, %v42_v46  ;;  %v5138_v52 = vld [vmem:[%s7748_s2 + $0x18c] ss:$16 sps:$4 sm:$0xff]   ;;  %v5140_v53 = vld [vmem:[%s7748_s2 + $0x180] ss:$16 sps:$4 sm:$0xff]   ;;  %v5141_v54 = vld [vmem:[%s7748_s2 + $0x188] ss:$16 sps:$4 sm:$0xff]  }
  0x13   :  { %1275 = vmatpush1.bf16.msra.mxu0 %v5092_v18  ;;  %1447 = vmatpush1.bf16.msra.mxu1 %v5093_v19  ;;  %v5142_v55 = vld [vmem:[%s7748_s2 + $0x1a4] ss:$16 sps:$4 sm:$0xff]   ;;  %v5144_v56 = vld [vmem:[%s7748_s2 + $0x1ac] ss:$16 sps:$4 sm:$0xff]   ;;  %v5146_v57 = vld [vmem:[%s7748_s2 + $0x1a0] ss:$16 sps:$4 sm:$0xff]  }
  0x14   :  { %1276 = vmatprep.subr.bf16.mxu0 %v5094_v20  ;;  %1448 = vmatprep.subr.bf16.mxu1 %v5096_v21  ;;  %v5147_v58 = vld [vmem:[%s7748_s2 + $0x1a8] ss:$16 sps:$4 sm:$0xff]   ;;  %v5148_v59 = vld [vmem:[%s7748_s2 + $0x1c4] ss:$16 sps:$4 sm:$0xff]   ;;  %v5150_v60 = vld [vmem:[%s7748_s2 + $0x1cc] ss:$16 sps:$4 sm:$0xff]  }
  0x15   :  { %1298 = vmatprep.mubr.bf16.mxu0 %v56_v50  ;;  %1470 = vmatprep.mubr.bf16.mxu1 %v56_v50  ;;  %v5152_v61 = vld [vmem:[%s7748_s2 + $0x1c0] ss:$16 sps:$4 sm:$0xff]   ;;  %v5153_v62 = vld [vmem:[%s7748_s2 + $0x1c8] ss:$16 sps:$4 sm:$0xff]   ;;  %v5154_v63 = vld [vmem:[%s7748_s2 + $0x1e4] ss:$16 sps:$4 sm:$0xff]  }
  0x16   :  { %v5156_v0 = vld [vmem:[%s7748_s2 + $0x1ec] ss:$16 sps:$4 sm:$0xff]   ;;  %v5158_v1 = vld [vmem:[%s7748_s2 + $0x1e0] ss:$16 sps:$4 sm:$0xff]   ;;  %v5159_v2 = vld [vmem:[%s7748_s2 + $0x1e8] ss:$16 sps:$4 sm:$0xff]  }
  0x17   :  { %1277 = vmatpush1.bf16.msra.mxu0 %v5098_v22  ;;  %1449 = vmatpush1.bf16.msra.mxu1 %v5099_v23  ;;  %v5162_v3 = vld [vmem:[%s7748_s2 + $0x204] ss:$16 sps:$4 sm:$0xff]   ;;  %v48_v5 = vld [vmem:[%s7746_s0 + $0x38] sm:$0xff]  ;;  %v5160_v7 = vld [vmem:[%s7748_s2 + $0x200] ss:$16 sps:$4 sm:$0xff]  }
  0x18   :  { %1278 = vmatprep.subr.bf16.mxu0 %v5100_v24  ;;  %1450 = vmatprep.subr.bf16.mxu1 %v5102_v25  ;;  %v41_v4 = vld [vmem:[%s7746_s0] sm:$0xff]  ;;  %v5165_v6 = vld [vmem:[%s7748_s2 + $0x20c] ss:$16 sps:$4 sm:$0xff]   ;;  %v5163_v8 = vld [vmem:[%s7748_s2 + $0x208] ss:$16 sps:$4 sm:$0xff]  }
  0x19   :  { %v55_v9 = vpack.c.bf16 %v48_v5, %v41_v4  ;;  %v5168_v10 = vld [vmem:[%s7748_s2 + $0x224] ss:$16 sps:$4 sm:$0xff]   ;;  %v5171_v11 = vld [vmem:[%s7748_s2 + $0x22c] ss:$16 sps:$4 sm:$0xff]   ;;  %v5166_v12 = vld [vmem:[%s7748_s2 + $0x220] ss:$16 sps:$4 sm:$0xff]  }
  0x1a   :  { %v5169_v13 = vld [vmem:[%s7748_s2 + $0x228] ss:$16 sps:$4 sm:$0xff]   ;;  %v5174_v14 = vld [vmem:[%s7748_s2 + $0x244] ss:$16 sps:$4 sm:$0xff]   ;;  %v5177_v15 = vld [vmem:[%s7748_s2 + $0x24c] ss:$16 sps:$4 sm:$0xff]  }
  0x1b   :  { %1279 = vmatpush1.bf16.msra.mxu0 %v5104_v26  ;;  %1451 = vmatpush1.bf16.msra.mxu1 %v5105_v27  ;;  %v5172_v16 = vld [vmem:[%s7748_s2 + $0x240] ss:$16 sps:$4 sm:$0xff]   ;;  %v5175_v17 = vld [vmem:[%s7748_s2 + $0x248] ss:$16 sps:$4 sm:$0xff]   ;;  %v5180_v18 = vld [vmem:[%s7748_s2 + $0x264] ss:$16 sps:$4 sm:$0xff]  }
  0x1c   :  { %1280 = vmatprep.subr.bf16.mxu0 %v5106_v28  ;;  %1452 = vmatprep.subr.bf16.mxu1 %v5108_v29  ;;  %v5183_v19 = vld [vmem:[%s7748_s2 + $0x26c] ss:$16 sps:$4 sm:$0xff]   ;;  %v5178_v20 = vld [vmem:[%s7748_s2 + $0x260] ss:$16 sps:$4 sm:$0xff]   ;;  %v5181_v21 = vld [vmem:[%s7748_s2 + $0x268] ss:$16 sps:$4 sm:$0xff]  }
  0x1d   :  { %v5186_v22 = vld [vmem:[%s7748_s2 + $0x284] ss:$16 sps:$4 sm:$0xff]   ;;  %v5189_v23 = vld [vmem:[%s7748_s2 + $0x28c] ss:$16 sps:$4 sm:$0xff]   ;;  %v5184_v24 = vld [vmem:[%s7748_s2 + $0x280] ss:$16 sps:$4 sm:$0xff]  }
  0x1e   :  { %v5187_v25 = vld [vmem:[%s7748_s2 + $0x288] ss:$16 sps:$4 sm:$0xff]   ;;  %v5192_v26 = vld [vmem:[%s7748_s2 + $0x2a4] ss:$16 sps:$4 sm:$0xff]   ;;  %v5195_v27 = vld [vmem:[%s7748_s2 + $0x2ac] ss:$16 sps:$4 sm:$0xff]  }
  0x1f   :  { %1281 = vmatpush1.bf16.msra.mxu0 %v5110_v30  ;;  %1453 = vmatpush1.bf16.msra.mxu1 %v5111_v31  ;;  %v5190_v28 = vld [vmem:[%s7748_s2 + $0x2a0] ss:$16 sps:$4 sm:$0xff]   ;;  %v5193_v29 = vld [vmem:[%s7748_s2 + $0x2a8] ss:$16 sps:$4 sm:$0xff]   ;;  %v5198_v30 = vld [vmem:[%s7748_s2 + $0x2c4] ss:$16 sps:$4 sm:$0xff]  }
  0x20   :  { %1282 = vmatprep.subr.bf16.mxu0 %v5112_v32  ;;  %1454 = vmatprep.subr.bf16.mxu1 %v5114_v33  ;;  %v5201_v31 = vld [vmem:[%s7748_s2 + $0x2cc] ss:$16 sps:$4 sm:$0xff]   ;;  %v51_v33 = vld [vmem:[%s7746_s0 + $0x50] sm:$0xff]  ;;  %v5247_v4 = vld [vmem:[%s7748_s2 + $0x3c8] ss:$16 sps:$4 sm:$0xff]  }
  0x21   :  { %v44_v32 = vld [vmem:[%s7746_s0 + $0x18] sm:$0xff]  ;;  %v5214_v47 = vld [vmem:[%s7748_s2 + $0x320] ss:$16 sps:$4 sm:$0xff]   ;;  %v5252_v5 = vld [vmem:[%s7748_s2 + $0x3e4] ss:$16 sps:$4 sm:$0xff]  }
  0x22   :  { %v5219_v46 = vld [vmem:[%s7748_s2 + $0x32c] ss:$16 sps:$4 sm:$0xff]  }
  0x23   :  { %1283 = vmatpush1.bf16.msra.mxu0 %v5116_v34  ;;  %1455 = vmatpush1.bf16.msra.mxu1 %v5117_v35  ;;  %v5196_v34 = vld [vmem:[%s7748_s2 + $0x2c0] ss:$16 sps:$4 sm:$0xff]   ;;  %v5199_v35 = vld [vmem:[%s7748_s2 + $0x2c8] ss:$16 sps:$4 sm:$0xff]   ;;  %v5225_v50 = vld [vmem:[%s7748_s2 + $0x34c] ss:$16 sps:$4 sm:$0xff]  }
  0x24   :  { %1284 = vmatprep.subr.bf16.mxu0 %v5118_v36  ;;  %1456 = vmatprep.subr.bf16.mxu1 %v5120_v37  ;;  %v58_v36 = vpack.c.bf16 %v51_v33, %v44_v32  ;;  %v5204_v37 = vld [vmem:[%s7748_s2 + $0x2e4] ss:$16 sps:$4 sm:$0xff]   ;;  %v5285_v32 = vld [vmem:[%s7748_s2 + $0x48c] ss:$16 sps:$4 sm:$0xff]   ;;  %v5280_v33 = vld [vmem:[%s7748_s2 + $0x480] ss:$16 sps:$4 sm:$0xff]  }
  0x27   :  { %1285 = vmatpush1.bf16.msra.mxu0 %v5122_v38  ;;  %1457 = vmatpush1.bf16.msra.mxu1 %v5123_v39  ;;  %v5207_v38 = vld [vmem:[%s7748_s2 + $0x2ec] ss:$16 sps:$4 sm:$0xff]   ;;  %v5202_v39 = vld [vmem:[%s7748_s2 + $0x2e0] ss:$16 sps:$4 sm:$0xff]  }
  0x28   :  { %1286 = vmatprep.subr.bf16.mxu0 %v5124_v40  ;;  %1458 = vmatprep.subr.bf16.mxu1 %v5126_v41  ;;  %v5205_v40 = vld [vmem:[%s7748_s2 + $0x2e8] ss:$16 sps:$4 sm:$0xff]   ;;  %v5210_v41 = vld [vmem:[%s7748_s2 + $0x304] ss:$16 sps:$4 sm:$0xff]  }
  0x2b   :  { %1287 = vmatpush1.bf16.msra.mxu0 %v5128_v42  ;;  %1459 = vmatpush1.bf16.msra.mxu1 %v5129_v43  ;;  %v5213_v42 = vld [vmem:[%s7748_s2 + $0x30c] ss:$16 sps:$4 sm:$0xff]   ;;  %v5208_v43 = vld [vmem:[%s7748_s2 + $0x300] ss:$16 sps:$4 sm:$0xff]  }
  0x2c   :  { %1288 = vmatprep.subr.bf16.mxu0 %v5130_v44  ;;  %1460 = vmatprep.subr.bf16.mxu1 %v5132_v45  ;;  %v5211_v44 = vld [vmem:[%s7748_s2 + $0x308] ss:$16 sps:$4 sm:$0xff]   ;;  %v5216_v45 = vld [vmem:[%s7748_s2 + $0x324] ss:$16 sps:$4 sm:$0xff]  }
  0x2f   :  { %1289 = vmatpush1.bf16.msra.mxu0 %v5134_v48  ;;  %1461 = vmatpush1.bf16.msra.mxu1 %v5135_v49  ;;  %v5217_v48 = vld [vmem:[%s7748_s2 + $0x328] ss:$16 sps:$4 sm:$0xff]   ;;  %v5222_v49 = vld [vmem:[%s7748_s2 + $0x344] ss:$16 sps:$4 sm:$0xff]  }
  0x30   :  { %1290 = vmatprep.subr.bf16.mxu0 %v5136_v51  ;;  %1462 = vmatprep.subr.bf16.mxu1 %v5138_v52  ;;  %v5220_v51 = vld [vmem:[%s7748_s2 + $0x340] ss:$16 sps:$4 sm:$0xff]   ;;  %v5223_v52 = vld [vmem:[%s7748_s2 + $0x348] ss:$16 sps:$4 sm:$0xff]  }
  0x33   :  { %1291 = vmatpush1.bf16.msra.mxu0 %v5140_v53  ;;  %1463 = vmatpush1.bf16.msra.mxu1 %v5141_v54  ;;  %v5228_v53 = vld [vmem:[%s7748_s2 + $0x364] ss:$16 sps:$4 sm:$0xff]   ;;  %v5231_v54 = vld [vmem:[%s7748_s2 + $0x36c] ss:$16 sps:$4 sm:$0xff]  }
  0x34   :  { %1292 = vmatprep.subr.bf16.mxu0 %v5142_v55  ;;  %1464 = vmatprep.subr.bf16.mxu1 %v5144_v56  ;;  %v5226_v55 = vld [vmem:[%s7748_s2 + $0x360] ss:$16 sps:$4 sm:$0xff]   ;;  %v5229_v56 = vld [vmem:[%s7748_s2 + $0x368] ss:$16 sps:$4 sm:$0xff]  }
  0x37   :  { %1293 = vmatpush1.bf16.msra.mxu0 %v5146_v57  ;;  %1465 = vmatpush1.bf16.msra.mxu1 %v5147_v58  ;;  %v5234_v57 = vld [vmem:[%s7748_s2 + $0x384] ss:$16 sps:$4 sm:$0xff]   ;;  %v5237_v58 = vld [vmem:[%s7748_s2 + $0x38c] ss:$16 sps:$4 sm:$0xff]  }
  0x38   :  { %1294 = vmatprep.subr.bf16.mxu0 %v5148_v59  ;;  %1466 = vmatprep.subr.bf16.mxu1 %v5150_v60  ;;  %v5232_v59 = vld [vmem:[%s7748_s2 + $0x380] ss:$16 sps:$4 sm:$0xff]   ;;  %v5235_v60 = vld [vmem:[%s7748_s2 + $0x388] ss:$16 sps:$4 sm:$0xff]  }
  0x3b   :  { %1295 = vmatpush1.bf16.msra.mxu0 %v5152_v61  ;;  %1467 = vmatpush1.bf16.msra.mxu1 %v5153_v62  ;;  %v5240_v61 = vld [vmem:[%s7748_s2 + $0x3a4] ss:$16 sps:$4 sm:$0xff]   ;;  %v5243_v62 = vld [vmem:[%s7748_s2 + $0x3ac] ss:$16 sps:$4 sm:$0xff]  }
  0x3c   :  { %1296 = vmatprep.subr.bf16.mxu0 %v5154_v63  ;;  %1468 = vmatprep.subr.bf16.mxu1 %v5156_v0  ;;  %v5238_v63 = vld [vmem:[%s7748_s2 + $0x3a0] ss:$16 sps:$4 sm:$0xff]   ;;  %v5241_v0 = vld [vmem:[%s7748_s2 + $0x3a8] ss:$16 sps:$4 sm:$0xff]  }
  0x3f   :  { %1297 = vmatpush1.bf16.msra.mxu0 %v5158_v1  ;;  %1469 = vmatpush1.bf16.msra.mxu1 %v5159_v2  ;;  %v5246_v1 = vld [vmem:[%s7748_s2 + $0x3c4] ss:$16 sps:$4 sm:$0xff]   ;;  %v5249_v2 = vld [vmem:[%s7748_s2 + $0x3cc] ss:$16 sps:$4 sm:$0xff]  }
  0x40   :  { %1309 = vmatprep.subr.bf16.mxu0 %v5162_v3  ;;  %1481 = vmatprep.subr.bf16.mxu1 %v5165_v6  ;;  %v5244_v3 = vld [vmem:[%s7748_s2 + $0x3c0] ss:$16 sps:$4 sm:$0xff]   ;;  %v5255_v6 = vld [vmem:[%s7748_s2 + $0x3ec] ss:$16 sps:$4 sm:$0xff]  }
  0x42   :  { %1299 = vmatmul.mubr.bf16.vlgmr.msra.gmra.mrb[0].mxu0 %v55_v9  ;;  %1471 = vmatmul.mubr.bf16.vlgmr.msra.gmra.mrb[0].mxu1 %v55_v9  ;;  %v5258_v9 = vld [vmem:[%s7748_s2 + $0x404] ss:$16 sps:$4 sm:$0xff]  }
  0x43   :  { %1310 = vmatpush1.bf16.msra.mxu0 %v5160_v7  ;;  %1482 = vmatpush1.bf16.msra.mxu1 %v5163_v8  ;;  %v5250_v7 = vld [vmem:[%s7748_s2 + $0x3e0] ss:$16 sps:$4 sm:$0xff]   ;;  %v5253_v8 = vld [vmem:[%s7748_s2 + $0x3e8] ss:$16 sps:$4 sm:$0xff]  }
  0x44   :  { %1311 = vmatprep.subr.bf16.mxu0 %v5168_v10  ;;  %1483 = vmatprep.subr.bf16.mxu1 %v5171_v11  ;;  %v43_v10 = vld [vmem:[%s7746_s0 + $0x10] sm:$0xff]  ;;  %v50_v11 = vld [vmem:[%s7746_s0 + $0x48] sm:$0xff] }
  0x45   :  { %1341 = vmatprep.mubr.bf16.mxu0 %v58_v36  ;;  %1513 = vmatprep.mubr.bf16.mxu1 %v58_v36  ;;  %v5291_v36 = vld [vmem:[%s7748_s2 + $0x4ac] ss:$16 sps:$4 sm:$0xff]  }
  0x47   :  { %1312 = vmatpush1.bf16.msra.mxu0 %v5166_v12  ;;  %1484 = vmatpush1.bf16.msra.mxu1 %v5169_v13  ;;  %v5261_v12 = vld [vmem:[%s7748_s2 + $0x40c] ss:$16 sps:$4 sm:$0xff]   ;;  %v5256_v13 = vld [vmem:[%s7748_s2 + $0x400] ss:$16 sps:$4 sm:$0xff]  }
  0x48   :  { %1313 = vmatprep.subr.bf16.mxu0 %v5174_v14  ;;  %1485 = vmatprep.subr.bf16.mxu1 %v5177_v15  ;;  %v5259_v14 = vld [vmem:[%s7748_s2 + $0x408] ss:$16 sps:$4 sm:$0xff]   ;;  %v57_v15 = vpack.c.bf16 %v50_v11, %v43_v10  ;;  %v5348_v11 = vld [vmem:[%s7748_s2 + $0x5e4] ss:$16 sps:$4 sm:$0xff]  }
  0x49   :  { %v5343_v10 = vld [vmem:[%s7748_s2 + $0x5c8] ss:$16 sps:$4 sm:$0xff]  }
  0x4b   :  { %1314 = vmatpush1.bf16.msra.mxu0 %v5172_v16  ;;  %1486 = vmatpush1.bf16.msra.mxu1 %v5175_v17  ;;  %v5264_v16 = vld [vmem:[%s7748_s2 + $0x424] ss:$16 sps:$4 sm:$0xff]   ;;  %v5267_v17 = vld [vmem:[%s7748_s2 + $0x42c] ss:$16 sps:$4 sm:$0xff]  }
  0x4c   :  { %1315 = vmatprep.subr.bf16.mxu0 %v5180_v18  ;;  %1487 = vmatprep.subr.bf16.mxu1 %v5183_v19  ;;  %v46_v18 = vld [vmem:[%s7746_s0 + $0x28] sm:$0xff]  ;;  %v5262_v19 = vld [vmem:[%s7748_s2 + $0x420] ss:$16 sps:$4 sm:$0xff]  }
  0x4f   :  { %1316 = vmatpush1.bf16.msra.mxu0 %v5178_v20  ;;  %1488 = vmatpush1.bf16.msra.mxu1 %v5181_v21  ;;  %v5265_v20 = vld [vmem:[%s7748_s2 + $0x428] ss:$16 sps:$4 sm:$0xff]   ;;  %v53_v21 = vld [vmem:[%s7746_s0 + $0x60] sm:$0xff] }
  0x50   :  { %1317 = vmatprep.subr.bf16.mxu0 %v5186_v22  ;;  %1489 = vmatprep.subr.bf16.mxu1 %v5189_v23  ;;  %v5270_v22 = vld [vmem:[%s7748_s2 + $0x444] ss:$16 sps:$4 sm:$0xff]   ;;  %v60_v23 = vpack.c.bf16 %v53_v21, %v46_v18  ;;  %v5357_v18 = vld [vmem:[%s7748_s2 + $0x60c] ss:$16 sps:$4 sm:$0xff]  }
  0x53   :  { %1318 = vmatpush1.bf16.msra.mxu0 %v5184_v24  ;;  %1490 = vmatpush1.bf16.msra.mxu1 %v5187_v25  ;;  %v5273_v24 = vld [vmem:[%s7748_s2 + $0x44c] ss:$16 sps:$4 sm:$0xff]   ;;  %v5268_v25 = vld [vmem:[%s7748_s2 + $0x440] ss:$16 sps:$4 sm:$0xff]  }
  0x54   :  { %1319 = vmatprep.subr.bf16.mxu0 %v5192_v26  ;;  %1491 = vmatprep.subr.bf16.mxu1 %v5195_v27  ;;  %v5271_v26 = vld [vmem:[%s7748_s2 + $0x448] ss:$16 sps:$4 sm:$0xff]   ;;  %v5276_v27 = vld [vmem:[%s7748_s2 + $0x464] ss:$16 sps:$4 sm:$0xff]  }
  0x57   :  { %1320 = vmatpush1.bf16.msra.mxu0 %v5190_v28  ;;  %1492 = vmatpush1.bf16.msra.mxu1 %v5193_v29  ;;  %v5279_v28 = vld [vmem:[%s7748_s2 + $0x46c] ss:$16 sps:$4 sm:$0xff]   ;;  %v5274_v29 = vld [vmem:[%s7748_s2 + $0x460] ss:$16 sps:$4 sm:$0xff]  }
  0x58   :  { %1321 = vmatprep.subr.bf16.mxu0 %v5198_v30  ;;  %1493 = vmatprep.subr.bf16.mxu1 %v5201_v31  ;;  %v5277_v30 = vld [vmem:[%s7748_s2 + $0x468] ss:$16 sps:$4 sm:$0xff]   ;;  %v5282_v31 = vld [vmem:[%s7748_s2 + $0x484] ss:$16 sps:$4 sm:$0xff]  }
  0x5b   :  { %1322 = vmatpush1.bf16.msra.mxu0 %v5196_v34  ;;  %1494 = vmatpush1.bf16.msra.mxu1 %v5199_v35  ;;  %v5283_v34 = vld [vmem:[%s7748_s2 + $0x488] ss:$16 sps:$4 sm:$0xff]   ;;  %v5288_v35 = vld [vmem:[%s7748_s2 + $0x4a4] ss:$16 sps:$4 sm:$0xff]  }
  0x5c   :  { %1323 = vmatprep.subr.bf16.mxu0 %v5204_v37  ;;  %1495 = vmatprep.subr.bf16.mxu1 %v5207_v38  ;;  %v5286_v37 = vld [vmem:[%s7748_s2 + $0x4a0] ss:$16 sps:$4 sm:$0xff]   ;;  %v5289_v38 = vld [vmem:[%s7748_s2 + $0x4a8] ss:$16 sps:$4 sm:$0xff]  }
  0x5f   :  { %1324 = vmatpush1.bf16.msra.mxu0 %v5202_v39  ;;  %1496 = vmatpush1.bf16.msra.mxu1 %v5205_v40  ;;  %v5294_v39 = vld [vmem:[%s7748_s2 + $0x4c4] ss:$16 sps:$4 sm:$0xff]   ;;  %v5297_v40 = vld [vmem:[%s7748_s2 + $0x4cc] ss:$16 sps:$4 sm:$0xff]  }
  0x60   :  { %1325 = vmatprep.subr.bf16.mxu0 %v5210_v41  ;;  %1497 = vmatprep.subr.bf16.mxu1 %v5213_v42  ;;  %v5292_v41 = vld [vmem:[%s7748_s2 + $0x4c0] ss:$16 sps:$4 sm:$0xff]   ;;  %v5295_v42 = vld [vmem:[%s7748_s2 + $0x4c8] ss:$16 sps:$4 sm:$0xff]  }
  0x63   :  { %1326 = vmatpush1.bf16.msra.mxu0 %v5208_v43  ;;  %1498 = vmatpush1.bf16.msra.mxu1 %v5211_v44  ;;  %v5300_v43 = vld [vmem:[%s7748_s2 + $0x4e4] ss:$16 sps:$4 sm:$0xff]   ;;  %v5303_v44 = vld [vmem:[%s7748_s2 + $0x4ec] ss:$16 sps:$4 sm:$0xff]  }
  0x64   :  { %1327 = vmatprep.subr.bf16.mxu0 %v5216_v45  ;;  %1499 = vmatprep.subr.bf16.mxu1 %v5219_v46  ;;  %v5298_v45 = vld [vmem:[%s7748_s2 + $0x4e0] ss:$16 sps:$4 sm:$0xff]   ;;  %v5301_v46 = vld [vmem:[%s7748_s2 + $0x4e8] ss:$16 sps:$4 sm:$0xff]  }
  0x67   :  { %1328 = vmatpush1.bf16.msra.mxu0 %v5214_v47  ;;  %1500 = vmatpush1.bf16.msra.mxu1 %v5217_v48  ;;  %v5306_v47 = vld [vmem:[%s7748_s2 + $0x504] ss:$16 sps:$4 sm:$0xff]   ;;  %v5309_v48 = vld [vmem:[%s7748_s2 + $0x50c] ss:$16 sps:$4 sm:$0xff]  }
  0x68   :  { %1329 = vmatprep.subr.bf16.mxu0 %v5222_v49  ;;  %1501 = vmatprep.subr.bf16.mxu1 %v5225_v50  ;;  %v5304_v49 = vld [vmem:[%s7748_s2 + $0x500] ss:$16 sps:$4 sm:$0xff]   ;;  %v5307_v50 = vld [vmem:[%s7748_s2 + $0x508] ss:$16 sps:$4 sm:$0xff]  }
  0x6b   :  { %1330 = vmatpush1.bf16.msra.mxu0 %v5220_v51  ;;  %1502 = vmatpush1.bf16.msra.mxu1 %v5223_v52  ;;  %v5312_v51 = vld [vmem:[%s7748_s2 + $0x524] ss:$16 sps:$4 sm:$0xff]   ;;  %v5315_v52 = vld [vmem:[%s7748_s2 + $0x52c] ss:$16 sps:$4 sm:$0xff]  }
  0x6c   :  { %1331 = vmatprep.subr.bf16.mxu0 %v5228_v53  ;;  %1503 = vmatprep.subr.bf16.mxu1 %v5231_v54  ;;  %v5310_v53 = vld [vmem:[%s7748_s2 + $0x520] ss:$16 sps:$4 sm:$0xff]   ;;  %v5313_v54 = vld [vmem:[%s7748_s2 + $0x528] ss:$16 sps:$4 sm:$0xff]  }
  0x6f   :  { %1332 = vmatpush1.bf16.msra.mxu0 %v5226_v55  ;;  %1504 = vmatpush1.bf16.msra.mxu1 %v5229_v56  ;;  %v5318_v55 = vld [vmem:[%s7748_s2 + $0x544] ss:$16 sps:$4 sm:$0xff]   ;;  %v5321_v56 = vld [vmem:[%s7748_s2 + $0x54c] ss:$16 sps:$4 sm:$0xff]  }
  0x70   :  { %1333 = vmatprep.subr.bf16.mxu0 %v5234_v57  ;;  %1505 = vmatprep.subr.bf16.mxu1 %v5237_v58  ;;  %v5316_v57 = vld [vmem:[%s7748_s2 + $0x540] ss:$16 sps:$4 sm:$0xff]   ;;  %v5319_v58 = vld [vmem:[%s7748_s2 + $0x548] ss:$16 sps:$4 sm:$0xff]  }
  0x73   :  { %1334 = vmatpush1.bf16.msra.mxu0 %v5232_v59  ;;  %1506 = vmatpush1.bf16.msra.mxu1 %v5235_v60  ;;  %v5324_v59 = vld [vmem:[%s7748_s2 + $0x564] ss:$16 sps:$4 sm:$0xff]   ;;  %v5327_v60 = vld [vmem:[%s7748_s2 + $0x56c] ss:$16 sps:$4 sm:$0xff]  }
  0x74   :  { %1335 = vmatprep.subr.bf16.mxu0 %v5240_v61  ;;  %1507 = vmatprep.subr.bf16.mxu1 %v5243_v62  ;;  %v5322_v61 = vld [vmem:[%s7748_s2 + $0x560] ss:$16 sps:$4 sm:$0xff]   ;;  %v5325_v62 = vld [vmem:[%s7748_s2 + $0x568] ss:$16 sps:$4 sm:$0xff]  }
  0x77   :  { %1336 = vmatpush1.bf16.msra.mxu0 %v5238_v63  ;;  %1508 = vmatpush1.bf16.msra.mxu1 %v5241_v0  ;;  %v5330_v63 = vld [vmem:[%s7748_s2 + $0x584] ss:$16 sps:$4 sm:$0xff]   ;;  %v5333_v0 = vld [vmem:[%s7748_s2 + $0x58c] ss:$16 sps:$4 sm:$0xff]  }
  0x78   :  { %1337 = vmatprep.subr.bf16.mxu0 %v5246_v1  ;;  %1509 = vmatprep.subr.bf16.mxu1 %v5249_v2  ;;  %v5328_v1 = vld [vmem:[%s7748_s2 + $0x580] ss:$16 sps:$4 sm:$0xff]   ;;  %v5331_v2 = vld [vmem:[%s7748_s2 + $0x588] ss:$16 sps:$4 sm:$0xff]  }
  0x7b   :  { %1338 = vmatpush1.bf16.msra.mxu0 %v5244_v3  ;;  %1510 = vmatpush1.bf16.msra.mxu1 %v5247_v4  ;;  %v5336_v3 = vld [vmem:[%s7748_s2 + $0x5a4] ss:$16 sps:$4 sm:$0xff]   ;;  %v5339_v4 = vld [vmem:[%s7748_s2 + $0x5ac] ss:$16 sps:$4 sm:$0xff]  }
  0x7c   :  { %1339 = vmatprep.subr.bf16.mxu0 %v5252_v5  ;;  %1511 = vmatprep.subr.bf16.mxu1 %v5255_v6  ;;  %v5334_v5 = vld [vmem:[%s7748_s2 + $0x5a0] ss:$16 sps:$4 sm:$0xff]   ;;  %v5337_v6 = vld [vmem:[%s7748_s2 + $0x5a8] ss:$16 sps:$4 sm:$0xff]  }
  0x7f   :  { %1340 = vmatpush1.bf16.msra.mxu0 %v5250_v7  ;;  %1512 = vmatpush1.bf16.msra.mxu1 %v5253_v8  ;;  %v5342_v7 = vld [vmem:[%s7748_s2 + $0x5c4] ss:$16 sps:$4 sm:$0xff]   ;;  %v5345_v8 = vld [vmem:[%s7748_s2 + $0x5cc] ss:$16 sps:$4 sm:$0xff]  }
  0x80   :  { %1352 = vmatprep.subr.bf16.mxu0 %v5258_v9  ;;  %1524 = vmatprep.subr.bf16.mxu1 %v5261_v12  ;;  %v5340_v9 = vld [vmem:[%s7748_s2 + $0x5c0] ss:$16 sps:$4 sm:$0xff]   ;;  %v5351_v12 = vld [vmem:[%s7748_s2 + $0x5ec] ss:$16 sps:$4 sm:$0xff]  }
  0x82   :  { %1342 = vmatmul.mubr.bf16.vlgmr.msra.gmra.mrb[0].mxu0 %v57_v15  ;;  %1514 = vmatmul.mubr.bf16.vlgmr.msra.gmra.mrb[0].mxu1 %v57_v15  ;;  %v45_v15 = vld [vmem:[%s7746_s0 + $0x20] sm:$0xff] }
  0x83   :  { %1353 = vmatpush1.bf16.msra.mxu0 %v5256_v13  ;;  %1525 = vmatpush1.bf16.msra.mxu1 %v5259_v14  ;;  %v5346_v13 = vld [vmem:[%s7748_s2 + $0x5e0] ss:$16 sps:$4 sm:$0xff]   ;;  %v5349_v14 = vld [vmem:[%s7748_s2 + $0x5e8] ss:$16 sps:$4 sm:$0xff]  }
  0x84   :  { %1354 = vmatprep.subr.bf16.mxu0 %v5264_v16  ;;  %1526 = vmatprep.subr.bf16.mxu1 %v5267_v17  ;;  %v52_v16 = vld [vmem:[%s7746_s0 + $0x58] sm:$0xff]  ;;  %v5354_v17 = vld [vmem:[%s7748_s2 + $0x604] ss:$16 sps:$4 sm:$0xff]  }
  0x85   :  { %1384 = vmatprep.mubr.bf16.mxu0 %v60_v23  ;;  %1556 = vmatprep.mubr.bf16.mxu1 %v60_v23  ;;  %v59_v21 = vpack.c.bf16 %v52_v16, %v45_v15  ;;  %v5952_v23 = vmov 0  }
  0x87   :  { %1355 = vmatpush1.bf16.msra.mxu0 %v5262_v19  ;;  %1527 = vmatpush1.bf16.msra.mxu1 %v5265_v20  ;;  %v5352_v19 = vld [vmem:[%s7748_s2 + $0x600] ss:$16 sps:$4 sm:$0xff]   ;;  %v5355_v20 = vld [vmem:[%s7748_s2 + $0x608] ss:$16 sps:$4 sm:$0xff]  }
  0x88   :  { %1356 = vmatprep.subr.bf16.mxu0 %v5270_v22  ;;  %1528 = vmatprep.subr.bf16.mxu1 %v5273_v24  ;;  %v5360_v22 = vld [vmem:[%s7750_s4 + $0x4] ss:$8 sps:$4 sm:$0xff]   ;;  %v47_v24 = vld [vmem:[%s7746_s0 + $0x30] sm:$0xff] }
  0x8b   :  { %1357 = vmatpush1.bf16.msra.mxu0 %v5268_v25  ;;  %1529 = vmatpush1.bf16.msra.mxu1 %v5271_v26  ;;  %v54_v25 = vld [vmem:[%s7746_s0 + $0x68] sm:$0xff] }
  0x8c   :  { %1358 = vmatprep.subr.bf16.mxu0 %v5276_v27  ;;  %1530 = vmatprep.subr.bf16.mxu1 %v5279_v28  ;;  %v5358_v26 = vld [vmem:[%s7750_s4] ss:$8 sps:$4 sm:$0xff]   ;;  %v61_v27 = vpack.c.bf16 %v54_v25, %v47_v24  ;;  %v5363_v28 = vld [vmem:[%s7750_s4 + $0x14] ss:$8 sps:$4 sm:$0xff]  }
  0x8f   :  { %1359 = vmatpush1.bf16.msra.mxu0 %v5274_v29  ;;  %1531 = vmatpush1.bf16.msra.mxu1 %v5277_v30  ;;  %v5361_v29 = vld [vmem:[%s7750_s4 + $0x10] ss:$8 sps:$4 sm:$0xff]   ;;  %v5366_v30 = vld [vmem:[%s7750_s4 + $0x24] ss:$8 sps:$4 sm:$0xff]  }
  0x90   :  { %1360 = vmatprep.subr.bf16.mxu0 %v5282_v31  ;;  %1532 = vmatprep.subr.bf16.mxu1 %v5285_v32  ;;  %v5364_v31 = vld [vmem:[%s7750_s4 + $0x20] ss:$8 sps:$4 sm:$0xff]   ;;  %v5369_v32 = vld [vmem:[%s7750_s4 + $0x34] ss:$8 sps:$4 sm:$0xff]  }
  0x93   :  { %1361 = vmatpush1.bf16.msra.mxu0 %v5280_v33  ;;  %1533 = vmatpush1.bf16.msra.mxu1 %v5283_v34  ;;  %v5367_v33 = vld [vmem:[%s7750_s4 + $0x30] ss:$8 sps:$4 sm:$0xff]   ;;  %v5372_v34 = vld [vmem:[%s7750_s4 + $0x44] ss:$8 sps:$4 sm:$0xff]  }
  0x94   :  { %1362 = vmatprep.subr.bf16.mxu0 %v5288_v35  ;;  %1534 = vmatprep.subr.bf16.mxu1 %v5291_v36  ;;  %v5370_v35 = vld [vmem:[%s7750_s4 + $0x40] ss:$8 sps:$4 sm:$0xff]   ;;  %v5375_v36 = vld [vmem:[%s7750_s4 + $0x54] ss:$8 sps:$4 sm:$0xff]  }
  0x97   :  { %1363 = vmatpush1.bf16.msra.mxu0 %v5286_v37  ;;  %1535 = vmatpush1.bf16.msra.mxu1 %v5289_v38  ;;  %v5373_v37 = vld [vmem:[%s7750_s4 + $0x50] ss:$8 sps:$4 sm:$0xff]   ;;  %v5378_v38 = vld [vmem:[%s7750_s4 + $0x64] ss:$8 sps:$4 sm:$0xff]  }
  0x98   :  { %1364 = vmatprep.subr.bf16.mxu0 %v5294_v39  ;;  %1536 = vmatprep.subr.bf16.mxu1 %v5297_v40  ;;  %v5376_v39 = vld [vmem:[%s7750_s4 + $0x60] ss:$8 sps:$4 sm:$0xff]   ;;  %v5381_v40 = vld [vmem:[%s7750_s4 + $0x74] ss:$8 sps:$4 sm:$0xff]  }
  0x9b   :  { %1365 = vmatpush1.bf16.msra.mxu0 %v5292_v41  ;;  %1537 = vmatpush1.bf16.msra.mxu1 %v5295_v42  ;;  %v5379_v41 = vld [vmem:[%s7750_s4 + $0x70] ss:$8 sps:$4 sm:$0xff]   ;;  %v5384_v42 = vld [vmem:[%s7750_s4 + $0x84] ss:$8 sps:$4 sm:$0xff]  }
  0x9c   :  { %1366 = vmatprep.subr.bf16.mxu0 %v5300_v43  ;;  %1538 = vmatprep.subr.bf16.mxu1 %v5303_v44  ;;  %v5382_v43 = vld [vmem:[%s7750_s4 + $0x80] ss:$8 sps:$4 sm:$0xff]   ;;  %v5387_v44 = vld [vmem:[%s7750_s4 + $0x94] ss:$8 sps:$4 sm:$0xff]  }
  0x9f   :  { %1367 = vmatpush1.bf16.msra.mxu0 %v5298_v45  ;;  %1539 = vmatpush1.bf16.msra.mxu1 %v5301_v46  ;;  %v5385_v45 = vld [vmem:[%s7750_s4 + $0x90] ss:$8 sps:$4 sm:$0xff]   ;;  %v5390_v46 = vld [vmem:[%s7750_s4 + $0xa4] ss:$8 sps:$4 sm:$0xff]  }
  0xa0   :  { %1368 = vmatprep.subr.bf16.mxu0 %v5306_v47  ;;  %1540 = vmatprep.subr.bf16.mxu1 %v5309_v48  ;;  %v5388_v47 = vld [vmem:[%s7750_s4 + $0xa0] ss:$8 sps:$4 sm:$0xff]   ;;  %v5393_v48 = vld [vmem:[%s7750_s4 + $0xb4] ss:$8 sps:$4 sm:$0xff]  }
  0xa3   :  { %1369 = vmatpush1.bf16.msra.mxu0 %v5304_v49  ;;  %1541 = vmatpush1.bf16.msra.mxu1 %v5307_v50  ;;  %v5391_v49 = vld [vmem:[%s7750_s4 + $0xb0] ss:$8 sps:$4 sm:$0xff]   ;;  %v5396_v50 = vld [vmem:[%s7750_s4 + $0xc4] ss:$8 sps:$4 sm:$0xff]  }
  0xa4   :  { %1370 = vmatprep.subr.bf16.mxu0 %v5312_v51  ;;  %1542 = vmatprep.subr.bf16.mxu1 %v5315_v52  ;;  %v5394_v51 = vld [vmem:[%s7750_s4 + $0xc0] ss:$8 sps:$4 sm:$0xff]   ;;  %v5399_v52 = vld [vmem:[%s7750_s4 + $0xd4] ss:$8 sps:$4 sm:$0xff]  }
  0xa7   :  { %1371 = vmatpush1.bf16.msra.mxu0 %v5310_v53  ;;  %1543 = vmatpush1.bf16.msra.mxu1 %v5313_v54  ;;  %v5397_v53 = vld [vmem:[%s7750_s4 + $0xd0] ss:$8 sps:$4 sm:$0xff]  }
  0xa8   :  { %1372 = vmatprep.subr.bf16.mxu0 %v5318_v55  ;;  %1544 = vmatprep.subr.bf16.mxu1 %v5321_v56 }
  0xab   :  { %1373 = vmatpush1.bf16.msra.mxu0 %v5316_v57  ;;  %1545 = vmatpush1.bf16.msra.mxu1 %v5319_v58 }
  0xac   :  { %1374 = vmatprep.subr.bf16.mxu0 %v5324_v59  ;;  %1546 = vmatprep.subr.bf16.mxu1 %v5327_v60 }
  0xaf   :  { %1375 = vmatpush1.bf16.msra.mxu0 %v5322_v61  ;;  %1547 = vmatpush1.bf16.msra.mxu1 %v5325_v62 }
  0xb0   :  { %1376 = vmatprep.subr.bf16.mxu0 %v5330_v63  ;;  %1548 = vmatprep.subr.bf16.mxu1 %v5333_v0 }
  0xb3   :  { %1377 = vmatpush1.bf16.msra.mxu0 %v5328_v1  ;;  %1549 = vmatpush1.bf16.msra.mxu1 %v5331_v2 }
  0xb4   :  { %1378 = vmatprep.subr.bf16.mxu0 %v5336_v3  ;;  %1550 = vmatprep.subr.bf16.mxu1 %v5339_v4 }
  0xb7   :  { %1379 = vmatpush1.bf16.msra.mxu0 %v5334_v5  ;;  %1551 = vmatpush1.bf16.msra.mxu1 %v5337_v6 }
  0xb8   :  { %1380 = vmatprep.subr.bf16.mxu0 %v5342_v7  ;;  %1552 = vmatprep.subr.bf16.mxu1 %v5345_v8 }
  0xbb   :  { %1381 = vmatpush1.bf16.msra.mxu0 %v5340_v9  ;;  %1553 = vmatpush1.bf16.msra.mxu1 %v5343_v10 }
  0xbc   :  { %1382 = vmatprep.subr.bf16.mxu0 %v5348_v11  ;;  %1554 = vmatprep.subr.bf16.mxu1 %v5351_v12 }
  0xbf   :  { %1383 = vmatpush1.bf16.msra.mxu0 %v5346_v13  ;;  %1555 = vmatpush1.bf16.msra.mxu1 %v5349_v14 }
  0xc0   :  { %1395 = vmatprep.subr.bf16.mxu0 %v5354_v17  ;;  %1567 = vmatprep.subr.bf16.mxu1 %v5357_v18 }
  0xc2   :  { %1385 = vmatmul.mubr.bf16.vlgmr.msra.gmra.mrb[0].mxu0 %v59_v21  ;;  %1557 = vmatmul.mubr.bf16.vlgmr.msra.gmra.mrb[0].mxu1 %v59_v21 }
  0xc3   :  { %1396 = vmatpush1.bf16.msra.mxu0 %v5352_v19  ;;  %1568 = vmatpush1.bf16.msra.mxu1 %v5355_v20 }
  0xc4   :  { %1427 = vmatprep.mubr.bf16.mxu0 %v5952_v23  ;;  %1599 = vmatprep.mubr.bf16.mxu1 %v5952_v23 }
  0xc5   :  { %2018 = vmatprep.subr.bf16.mxu0 %v5360_v22 }
  0xce   :  { %4596 = vmatmul.mubr.msk.bf16.vlgmr.msra.gmra.mrb[0].mxu0 %vm1262_vm0, %v61_v27  ;;  %4597 = vmatmul.mubr.msk.bf16.vlgmr.msra.gmra.mrb[0].mxu1 %vm1262_vm0, %v61_v27 }
  0xcf   :  { %2019 = vmatpush1.bf16.msra.mxu0 %v5358_v26  ;;  %2361 = vmatprep.mubr.bf16.mxu1 %v5952_v23 }
  0xd0   :  { %2020 = vmatprep.subr.bf16.mxu0 %v5363_v28 }
  0xd3   :  { %2021 = vmatpush1.bf16.msra.mxu0 %v5361_v29 }
  0xd4   :  { %2022 = vmatprep.subr.bf16.mxu0 %v5366_v30 }
  0xd7   :  { %2023 = vmatpush1.bf16.msra.mxu0 %v5364_v31 }
  0xd8   :  { %2024 = vmatprep.subr.bf16.mxu0 %v5369_v32 }
  0xdb   :  { %2025 = vmatpush1.bf16.msra.mxu0 %v5367_v33 }
  0xdc   :  { %2026 = vmatprep.subr.bf16.mxu0 %v5372_v34 }
  0xdf   :  { %2027 = vmatpush1.bf16.msra.mxu0 %v5370_v35 }
  0xe0   :  { %2028 = vmatprep.subr.bf16.mxu0 %v5375_v36 }
  0xe3   :  { %2029 = vmatpush1.bf16.msra.mxu0 %v5373_v37 }
  0xe4   :  { %2030 = vmatprep.subr.bf16.mxu0 %v5378_v38 }
  0xe7   :  { %2031 = vmatpush1.bf16.msra.mxu0 %v5376_v39 }
  0xe8   :  { %2032 = vmatprep.subr.bf16.mxu0 %v5381_v40 }
  0xeb   :  { %2033 = vmatpush1.bf16.msra.mxu0 %v5379_v41 }
  0xec   :  { %2034 = vmatprep.subr.bf16.mxu0 %v5384_v42 }
  0xef   :  { %2035 = vmatpush1.bf16.msra.mxu0 %v5382_v43 }
  0xf0   :  { %2036 = vmatprep.subr.bf16.mxu0 %v5387_v44 }
  0xf3   :  { %2037 = vmatpush1.bf16.msra.mxu0 %v5385_v45 }
  0xf4   :  { %2038 = vmatprep.subr.bf16.mxu0 %v5390_v46 }
  0xf7   :  { %2039 = vmatpush1.bf16.msra.mxu0 %v5388_v47 }
  0xf8   :  { %2040 = vmatprep.subr.bf16.mxu0 %v5393_v48 }
  0xfb   :  { %2041 = vmatpush1.bf16.msra.mxu0 %v5391_v49 }
  0xfc   :  { %2042 = vmatprep.subr.bf16.mxu0 %v5396_v50 }
  0xff   :  { %2043 = vmatpush1.bf16.msra.mxu0 %v5394_v51 }
 0x100   :  { %2044 = vmatprep.subr.bf16.mxu0 %v5399_v52 }
 0x103   :  { %2045 = vmatpush1.bf16.msra.mxu0 %v5397_v53 }
 0x104   :  { %19 = vsyncpa [#allocation5], 0  ;;  %v5402_v54 = vld [vmem:[%s7750_s4 + $0xe4] ss:$8 sps:$4 sm:$0xff]   ;;  %v5400_v55 = vld [vmem:[%s7750_s4 + $0xe0] ss:$8 sps:$4 sm:$0xff]   ;;  %v262_v63 = vlaneseq }
 0x105   :  { %2046 = vmatprep.subr.bf16.mxu0 %v5402_v54  ;;  %v5405_v56 = vld [vmem:[%s7750_s4 + $0xf4] ss:$8 sps:$4 sm:$0xff]   ;;  %v5403_v57 = vld [vmem:[%s7750_s4 + $0xf0] ss:$8 sps:$4 sm:$0xff]   ;;  %v5408_v58 = vld [vmem:[%s7750_s4 + $0x104] ss:$8 sps:$4 sm:$0xff]  }
 0x106   :  { %v5454_v59 = vld [vmem:[%s7752_s6] ss:$16 sps:$4 sm:$0xff]   ;;  %v5456_v60 = vld [vmem:[%s7752_s6 + $0x4] ss:$16 sps:$4 sm:$0xff]   ;;  %v6769_v0 = vshrl.u32 %v262_v63, 7 }
 0x107   :  { %2047 = vmatpush1.bf16.msra.mxu0 %v5400_v55  ;;  %v5459_v61 = vld [vmem:[%s7752_s6 + $0x24] ss:$16 sps:$4 sm:$0xff]   ;;  %2329 = vmatprep.subr.bf16.mxu1 %v5456_v60  ;;  %v5457_v62 = vld [vmem:[%s7752_s6 + $0x20] ss:$16 sps:$4 sm:$0xff]  }
 0x108   :  { %2048 = vmatprep.subr.bf16.mxu0 %v5405_v56  ;;  %2330 = vmatpush1.bf16.msra.mxu1 %v5454_v59  ;;  %v6772_v1 = vsub.s32 0, %v6769_v0  ;;  %v6775_v2 = vsub.s32 2, %v6769_v0  ;;  %v260_v3 = vld [vmem:[%s7749_s3] sm:$0xf]  ;;  %v6781_v4 = vsub.s32 1, %v6769_v0  ;;  %v6784_v5 = vsub.s32 3, %v6769_v0 }
 0x109   :  { %2331 = vmatprep.subr.bf16.mxu1 %v5459_v61  ;;  %v5406_v39 = vld [vmem:[%s7750_s4 + $0x100] ss:$8 sps:$4 sm:$0xff]   ;;  %v5411_v40 = vld [vmem:[%s7750_s4 + $0x114] ss:$8 sps:$4 sm:$0xff]   ;;  %v5409_v41 = vld [vmem:[%s7750_s4 + $0x110] ss:$8 sps:$4 sm:$0xff]  }
 0x10a   :  { %v265_v6 = vrot.slane %v260_v3, %v6772_v1  ;;  %v273_v7 = vrot.slane %v260_v3, %v6775_v2  ;;  %v269_v8 = vrot.slane %v260_v3, %v6781_v4  ;;  %v277_v9 = vrot.slane %v260_v3, %v6784_v5  ;;  %v5414_v42 = vld [vmem:[%s7750_s4 + $0x124] ss:$8 sps:$4 sm:$0xff]   ;;  %v5412_v43 = vld [vmem:[%s7750_s4 + $0x120] ss:$8 sps:$4 sm:$0xff]   ;;  %v5417_v44 = vld [vmem:[%s7750_s4 + $0x134] ss:$8 sps:$4 sm:$0xff]  }
 0x10b   :  { %2049 = vmatpush1.bf16.msra.mxu0 %v5403_v57  ;;  %v5415_v45 = vld [vmem:[%s7750_s4 + $0x130] ss:$8 sps:$4 sm:$0xff]   ;;  %v5420_v46 = vld [vmem:[%s7750_s4 + $0x144] ss:$8 sps:$4 sm:$0xff]   ;;  %v5418_v47 = vld [vmem:[%s7750_s4 + $0x140] ss:$8 sps:$4 sm:$0xff]  }
 0x10c   :  { %2061 = vmatprep.subr.bf16.mxu0 %v5408_v58  ;;  %2332 = vmatpush1.bf16.msra.mxu1 %v5457_v62  ;;  %v5423_v48 = vld [vmem:[%s7750_s4 + $0x154] ss:$8 sps:$4 sm:$0xff]   ;;  %v5421_v49 = vld [vmem:[%s7750_s4 + $0x150] ss:$8 sps:$4 sm:$0xff]   ;;  %v5426_v50 = vld [vmem:[%s7750_s4 + $0x164] ss:$8 sps:$4 sm:$0xff]  }
 0x10d   :  { %v5424_v51 = vld [vmem:[%s7750_s4 + $0x160] ss:$8 sps:$4 sm:$0xff]   ;;  %v5429_v52 = vld [vmem:[%s7750_s4 + $0x174] ss:$8 sps:$4 sm:$0xff]   ;;  %v5427_v53 = vld [vmem:[%s7750_s4 + $0x170] ss:$8 sps:$4 sm:$0xff]  }
 0x10e   :  { %v5432_v54 = vld [vmem:[%s7750_s4 + $0x184] ss:$8 sps:$4 sm:$0xff]   ;;  %v5430_v55 = vld [vmem:[%s7750_s4 + $0x180] ss:$8 sps:$4 sm:$0xff]   ;;  %v5435_v56 = vld [vmem:[%s7750_s4 + $0x194] ss:$8 sps:$4 sm:$0xff]  }
 0x10f   :  { %v5433_v57 = vld [vmem:[%s7750_s4 + $0x190] ss:$8 sps:$4 sm:$0xff]   ;;  %v5438_v58 = vld [vmem:[%s7750_s4 + $0x1a4] ss:$8 sps:$4 sm:$0xff]   ;;  %v5436_v59 = vld [vmem:[%s7750_s4 + $0x1a0] ss:$8 sps:$4 sm:$0xff]  }
 0x110   :  { %v5441_v60 = vld [vmem:[%s7750_s4 + $0x1b4] ss:$8 sps:$4 sm:$0xff]   ;;  %v5439_v61 = vld [vmem:[%s7750_s4 + $0x1b0] ss:$8 sps:$4 sm:$0xff]   ;;  %v5444_v62 = vld [vmem:[%s7750_s4 + $0x1c4] ss:$8 sps:$4 sm:$0xff]  }
 0x111   :  { %v5442_v63 = vld [vmem:[%s7750_s4 + $0x1c0] ss:$8 sps:$4 sm:$0xff]   ;;  %v5447_v3 = vld [vmem:[%s7750_s4 + $0x1d4] ss:$8 sps:$4 sm:$0xff]  }
 0x1a1   :  { %v1429_v10 = vpop.f32.mrb[0].mxu0  ;;  %v1601_v11 = vpop.f32.mrb[0].mxu1 }
 0x1a2   :  { %v4992_v12 = vadd.f32 %v1429_v10, %v265_v6  ;;  %v4996_v13 = vadd.f32 %v1601_v11, %v273_v7  ;;  %v1431_v14 = vpop.f32.mrb[1].mxu0  ;;  %v1603_v15 = vpop.f32.mrb[1].mxu1  ;;  %v5451_v10 = vld [vmem:[%s7750_s4 + $0x1f0] ss:$8 sps:$4 sm:$0xff]   ;;  %v5462_v11 = vld [vmem:[%s7752_s6 + $0x44] ss:$16 sps:$4 sm:$0xff]  }
 0x1a3   :  { %v4993_v16 = vadd.f32 %v1431_v14, %v269_v8  ;;  %v4997_v17 = vadd.f32 %v1603_v15, %v277_v9  ;;  %v1433_v18 = vpop.f32.mrb[2].mxu0  ;;  %v1605_v19 = vpop.f32.mrb[2].mxu1  ;;  %2333 = vmatprep.subr.bf16.mxu1 %v5462_v11  ;;  %v5463_v14 = vld [vmem:[%s7752_s6 + $0x60] ss:$16 sps:$4 sm:$0xff]   ;;  %v5468_v15 = vld [vmem:[%s7752_s6 + $0x84] ss:$16 sps:$4 sm:$0xff]  }
 0x1a4   :  { %v4994_v20 = vadd.f32 %v1433_v18, %v265_v6  ;;  %v4998_v21 = vadd.f32 %v1605_v19, %v273_v7  ;;  %v1435_v22 = vpop.f32.mrb[3].mxu0  ;;  %v1607_v24 = vpop.f32.mrb[3].mxu1  ;;  %v1610_v27 = vmax.f32 %v4992_v12, 0.0  ;;  %v1612_v28 = vmax.f32 %v4996_v13, 0.0  ;;  %v5445_v6 = vld [vmem:[%s7750_s4 + $0x1d0] ss:$8 sps:$4 sm:$0xff]  }
 0x1a5   :  { %v4995_v25 = vadd.f32 %v1435_v22, %v269_v8  ;;  %v4999_v26 = vadd.f32 %v1607_v24, %v277_v9  ;;  %v1611_v31 = vmax.f32 %v4993_v16, 0.0  ;;  %v1613_v32 = vmax.f32 %v4997_v17, 0.0  ;;  %v5450_v7 = vld [vmem:[%s7750_s4 + $0x1e4] ss:$8 sps:$4 sm:$0xff]   ;;  %v5448_v8 = vld [vmem:[%s7750_s4 + $0x1e0] ss:$8 sps:$4 sm:$0xff]  }
 0x1a6   :  { %v1614_v29 = vmax.f32 %v4994_v20, 0.0  ;;  %v1616_v30 = vmax.f32 %v4998_v21, 0.0  ;;  %v5453_v9 = vld [vmem:[%s7750_s4 + $0x1f4] ss:$8 sps:$4 sm:$0xff]   ;;  %v5460_v12 = vld [vmem:[%s7752_s6 + $0x40] ss:$16 sps:$4 sm:$0xff]  }
 0x1a7   :  { %v1615_v33 = vmax.f32 %v4995_v25, 0.0  ;;  %v1617_v34 = vmax.f32 %v4999_v26, 0.0  ;;  %2334 = vmatpush1.bf16.msra.mxu1 %v5460_v12  ;;  %v5465_v13 = vld [vmem:[%s7752_s6 + $0x64] ss:$16 sps:$4 sm:$0xff]   ;;  %v5466_v16 = vld [vmem:[%s7752_s6 + $0x80] ss:$16 sps:$4 sm:$0xff]  }
 0x1a8   :  { %v1618_v35 = vpack.c.bf16 %v1614_v29, %v1610_v27  ;;  %v6790_v36 = vpack.c.bf16 %v1616_v30, %v1612_v28  ;;  %2335 = vmatprep.subr.bf16.mxu1 %v5465_v13  ;;  %v5471_v17 = vld [vmem:[%s7752_s6 + $0xa4] ss:$16 sps:$4 sm:$0xff]   ;;  %v5469_v18 = vld [vmem:[%s7752_s6 + $0xa0] ss:$16 sps:$4 sm:$0xff]   ;;  %v5480_v24 = vld [vmem:[%s7752_s6 + $0xc] ss:$16 sps:$4 sm:$0xff]  }
 0x1a9   :  { %v1619_v37 = vpack.c.bf16 %v1615_v33, %v1611_v31  ;;  %v1621_v38 = vpack.c.bf16 %v1617_v34, %v1613_v32  ;;  %v5474_v19 = vld [vmem:[%s7752_s6 + $0xc4] ss:$16 sps:$4 sm:$0xff]   ;;  %v5472_v20 = vld [vmem:[%s7752_s6 + $0xc0] ss:$16 sps:$4 sm:$0xff]   ;;  %v5507_v26 = vld [vmem:[%s7754_s8 + $0xc] ss:$28 sps:$4 sm:$0xff]  }
 0x1aa   :  { %v5477_v21 = vld [vmem:[%s7752_s6 + $0xe4] ss:$16 sps:$4 sm:$0xff]   ;;  %v5475_v22 = vld [vmem:[%s7752_s6 + $0xe0] ss:$16 sps:$4 sm:$0xff]   ;;  %v5519_v29 = vld [vmem:[%s7754_s8 + $0x7c] ss:$28 sps:$4 sm:$0xff]  }
 0x1ab   :  { %2050 = vmatprep.mubr.bf16.mxu0 %v1619_v37  ;;  %2336 = vmatpush1.bf16.msra.mxu1 %v5463_v14  ;;  %v5505_v25 = vld [vmem:[%s7754_s8 + $0x8] ss:$28 sps:$4 sm:$0xff]   ;;  %v5511_v28 = vld [vmem:[%s7754_s8 + $0x40] ss:$28 sps:$4 sm:$0xff]   ;;  %v5517_v30 = vld [vmem:[%s7754_s8 + $0x78] ss:$28 sps:$4 sm:$0xff]  }
 0x1ac   :  { %2051 = vmatmul.mubr.bf16.vlgmr.msra.gmra.mrb[4].mxu0 %v1618_v35  ;;  %2337 = vmatprep.subr.bf16.mxu1 %v5468_v15  ;;  %v5513_v27 = vld [vmem:[%s7754_s8 + $0x44] ss:$28 sps:$4 sm:$0xff]   ;;  %v5525_v31 = vld [vmem:[%s7754_s8 + $0xb4] ss:$28 sps:$4 sm:$0xff]   ;;  %v5531_v33 = vld [vmem:[%s7754_s8 + $0xec] ss:$28 sps:$4 sm:$0xff]  }
 0x1ad   :  { %2062 = vmatpush1.bf16.msra.mxu0 %v5406_v39  ;;  %2093 = vmatprep.mubr.bf16.mxu0 %v1621_v38  ;;  %v5523_v32 = vld [vmem:[%s7754_s8 + $0xb0] ss:$28 sps:$4 sm:$0xff]   ;;  %v5529_v34 = vld [vmem:[%s7754_s8 + $0xe8] ss:$28 sps:$4 sm:$0xff]   ;;  %v5543_v37 = vld [vmem:[%s7754_s8 + $0x15c] ss:$28 sps:$4 sm:$0xff]  }
 0x1ae   :  { %2063 = vmatprep.subr.bf16.mxu0 %v5411_v40  ;;  %v5537_v35 = vld [vmem:[%s7754_s8 + $0x124] ss:$28 sps:$4 sm:$0xff]   ;;  %v5541_v38 = vld [vmem:[%s7754_s8 + $0x158] ss:$28 sps:$4 sm:$0xff]   ;;  %v5547_v40 = vld [vmem:[%s7754_s8 + $0x190] ss:$28 sps:$4 sm:$0xff]  }
 0x1af   :  { %2338 = vmatpush1.bf16.msra.mxu1 %v5466_v16  ;;  %v5549_v39 = vld [vmem:[%s7754_s8 + $0x194] ss:$28 sps:$4 sm:$0xff]   ;;  %v63_v11 = vld [vmem:[%s7747_s1 + $0x8] sm:$0xff] }
 0x1b0   :  { %2339 = vmatprep.subr.bf16.mxu1 %v5471_v17  ;;  %v5478_v17 = vld [vmem:[%s7752_s6 + $0x8] ss:$16 sps:$4 sm:$0xff]  }
 0x1b1   :  { %2064 = vmatpush1.bf16.msra.mxu0 %v5409_v41  ;;  %v5555_v41 = vld [vmem:[%s7754_s8 + $0x1cc] ss:$28 sps:$4 sm:$0xff]  }
 0x1b2   :  { %2065 = vmatprep.subr.bf16.mxu0 %v5414_v42  ;;  %v5553_v42 = vld [vmem:[%s7754_s8 + $0x1c8] ss:$28 sps:$4 sm:$0xff]  }
 0x1b3   :  { %2340 = vmatpush1.bf16.msra.mxu1 %v5469_v18 }
 0x1b4   :  { %2341 = vmatprep.subr.bf16.mxu1 %v5474_v19  ;;  %v5483_v19 = vld [vmem:[%s7752_s6 + $0x2c] ss:$16 sps:$4 sm:$0xff]  }
 0x1b5   :  { %2066 = vmatpush1.bf16.msra.mxu0 %v5412_v43  ;;  %v5561_v43 = vld [vmem:[%s7754_s8 + $0x204] ss:$28 sps:$4 sm:$0xff]  }
 0x1b6   :  { %2067 = vmatprep.subr.bf16.mxu0 %v5417_v44  ;;  %v5559_v44 = vld [vmem:[%s7754_s8 + $0x200] ss:$28 sps:$4 sm:$0xff]  }
 0x1b7   :  { %2342 = vmatpush1.bf16.msra.mxu1 %v5472_v20  ;;  %v5481_v20 = vld [vmem:[%s7752_s6 + $0x28] ss:$16 sps:$4 sm:$0xff]  }
 0x1b8   :  { %2343 = vmatprep.subr.bf16.mxu1 %v5477_v21  ;;  %v5486_v21 = vld [vmem:[%s7752_s6 + $0x4c] ss:$16 sps:$4 sm:$0xff]  }
 0x1b9   :  { %2068 = vmatpush1.bf16.msra.mxu0 %v5415_v45  ;;  %v5567_v45 = vld [vmem:[%s7754_s8 + $0x23c] ss:$28 sps:$4 sm:$0xff]  }
 0x1ba   :  { %2069 = vmatprep.subr.bf16.mxu0 %v5420_v46  ;;  %v5565_v46 = vld [vmem:[%s7754_s8 + $0x238] ss:$28 sps:$4 sm:$0xff]  }
 0x1bb   :  { %2344 = vmatpush1.bf16.msra.mxu1 %v5475_v22  ;;  %v5484_v22 = vld [vmem:[%s7752_s6 + $0x48] ss:$16 sps:$4 sm:$0xff]  }
 0x1bc   :  { %2372 = vmatprep.subr.bf16.mxu1 %v5480_v24  ;;  %v5489_v24 = vld [vmem:[%s7752_s6 + $0x6c] ss:$16 sps:$4 sm:$0xff]  }
 0x1bd   :  { %2070 = vmatpush1.bf16.msra.mxu0 %v5418_v47  ;;  %v5573_v47 = vld [vmem:[%s7754_s8 + $0x274] ss:$28 sps:$4 sm:$0xff]  }
 0x1be   :  { %2071 = vmatprep.subr.bf16.mxu0 %v5423_v48  ;;  %v5571_v48 = vld [vmem:[%s7754_s8 + $0x270] ss:$28 sps:$4 sm:$0xff]  }
 0x1c1   :  { %2072 = vmatpush1.bf16.msra.mxu0 %v5421_v49  ;;  %v5579_v49 = vld [vmem:[%s7754_s8 + $0x2ac] ss:$28 sps:$4 sm:$0xff]  }
 0x1c2   :  { %2073 = vmatprep.subr.bf16.mxu0 %v5426_v50  ;;  %v5577_v50 = vld [vmem:[%s7754_s8 + $0x2a8] ss:$28 sps:$4 sm:$0xff]  }
 0x1c5   :  { %2074 = vmatpush1.bf16.msra.mxu0 %v5424_v51  ;;  %v5585_v51 = vld [vmem:[%s7754_s8 + $0x2e4] ss:$28 sps:$4 sm:$0xff]  }
 0x1c6   :  { %2075 = vmatprep.subr.bf16.mxu0 %v5429_v52  ;;  %v5583_v52 = vld [vmem:[%s7754_s8 + $0x2e0] ss:$28 sps:$4 sm:$0xff]  }
 0x1c9   :  { %2076 = vmatpush1.bf16.msra.mxu0 %v5427_v53  ;;  %v1686_v53 = vld [vmem:[%s7751_s5] sm:$0x3] }
 0x1ca   :  { %2077 = vmatprep.subr.bf16.mxu0 %v5432_v54  ;;  %v1691_v54 = vrot.slane %v1686_v53, %v6772_v1 }
 0x1cd   :  { %2078 = vmatpush1.bf16.msra.mxu0 %v5430_v55  ;;  %v1695_v55 = vrot.slane %v1686_v53, %v6781_v4  ;;  %v5564_v53 = vld [vmem:[%s7754_s8 + $0x234] ss:$28 sps:$4 sm:$0xff]  }
 0x1ce   :  { %2079 = vmatprep.subr.bf16.mxu0 %v5435_v56 }
 0x1d1   :  { %2080 = vmatpush1.bf16.msra.mxu0 %v5433_v57 }
 0x1d2   :  { %2081 = vmatprep.subr.bf16.mxu0 %v5438_v58 }
 0x1d5   :  { %2082 = vmatpush1.bf16.msra.mxu0 %v5436_v59 }
 0x1d6   :  { %2083 = vmatprep.subr.bf16.mxu0 %v5441_v60 }
 0x1d9   :  { %2084 = vmatpush1.bf16.msra.mxu0 %v5439_v61 }
 0x1da   :  { %2085 = vmatprep.subr.bf16.mxu0 %v5444_v62 }
 0x1dd   :  { %2086 = vmatpush1.bf16.msra.mxu0 %v5442_v63 }
 0x1de   :  { %2087 = vmatprep.subr.bf16.mxu0 %v5447_v3 }
 0x1e1   :  { %2088 = vmatpush1.bf16.msra.mxu0 %v5445_v6 }
 0x1e2   :  { %2089 = vmatprep.subr.bf16.mxu0 %v5450_v7 }
 0x1e5   :  { %2090 = vmatpush1.bf16.msra.mxu0 %v5448_v8 }
 0x1e6   :  { %2091 = vmatprep.subr.bf16.mxu0 %v5453_v9  ;;  %v62_v9 = vld [vmem:[%s7747_s1] sm:$0xff] }
 0x1e9   :  { %2092 = vmatpush1.bf16.msra.mxu0 %v5451_v10 }
 0x1ea   :  { %3958 = vmatprep.subr.bf16.mxu0 %v5507_v26  ;;  %v5490_v26 = vld [vmem:[%s7752_s6 + $0x88] ss:$16 sps:$4 sm:$0xff]  }
 0x1ec   :  { %2094 = vmatmul.mubr.bf16.vlgmr.msra.gmra.mrb[4].mxu0 %v6790_v36  ;;  %v5535_v36 = vld [vmem:[%s7754_s8 + $0x120] ss:$28 sps:$4 sm:$0xff]  }
 0x1ed   :  { %3959 = vmatpush1.bf16.msra.mxu0 %v5505_v25  ;;  %v5492_v25 = vld [vmem:[%s7752_s6 + $0x8c] ss:$16 sps:$4 sm:$0xff]  }
 0x1ee   :  { %3960 = vmatprep.subr.bf16.mxu0 %v5513_v27  ;;  %v5495_v27 = vld [vmem:[%s7752_s6 + $0xac] ss:$16 sps:$4 sm:$0xff]  }
 0x1f1   :  { %3961 = vmatpush1.bf16.msra.mxu0 %v5511_v28  ;;  %v5493_v28 = vld [vmem:[%s7752_s6 + $0xa8] ss:$16 sps:$4 sm:$0xff]  }
 0x1f2   :  { %3962 = vmatprep.subr.bf16.mxu0 %v5519_v29  ;;  %v5498_v29 = vld [vmem:[%s7752_s6 + $0xcc] ss:$16 sps:$4 sm:$0xff]  }
 0x1f5   :  { %3963 = vmatpush1.bf16.msra.mxu0 %v5517_v30  ;;  %v5496_v30 = vld [vmem:[%s7752_s6 + $0xc8] ss:$16 sps:$4 sm:$0xff]  }
 0x1f6   :  { %3964 = vmatprep.subr.bf16.mxu0 %v5525_v31  ;;  %v5501_v31 = vld [vmem:[%s7752_s6 + $0xec] ss:$16 sps:$4 sm:$0xff]  }
 0x1f9   :  { %3965 = vmatpush1.bf16.msra.mxu0 %v5523_v32  ;;  %v5499_v32 = vld [vmem:[%s7752_s6 + $0xe8] ss:$16 sps:$4 sm:$0xff]  }
 0x1fa   :  { %3966 = vmatprep.subr.bf16.mxu0 %v5531_v33  ;;  %v5504_v33 = vld [vmem:[%s7754_s8 + $0x4] ss:$28 sps:$4 sm:$0xff]  }
 0x1fd   :  { %3967 = vmatpush1.bf16.msra.mxu0 %v5529_v34  ;;  %v5502_v34 = vld [vmem:[%s7754_s8] ss:$28 sps:$4 sm:$0xff]  }
 0x1fe   :  { %3968 = vmatprep.subr.bf16.mxu0 %v5537_v35  ;;  %v5510_v35 = vld [vmem:[%s7754_s8 + $0x3c] ss:$28 sps:$4 sm:$0xff]  }
 0x201   :  { %3969 = vmatpush1.bf16.msra.mxu0 %v5535_v36  ;;  %v5508_v36 = vld [vmem:[%s7754_s8 + $0x38] ss:$28 sps:$4 sm:$0xff]  }
 0x202   :  { %3970 = vmatprep.subr.bf16.mxu0 %v5543_v37  ;;  %v5516_v37 = vld [vmem:[%s7754_s8 + $0x74] ss:$28 sps:$4 sm:$0xff]  }
 0x205   :  { %3971 = vmatpush1.bf16.msra.mxu0 %v5541_v38  ;;  %v5514_v38 = vld [vmem:[%s7754_s8 + $0x70] ss:$28 sps:$4 sm:$0xff]  }
 0x206   :  { %3972 = vmatprep.subr.bf16.mxu0 %v5549_v39  ;;  %v5522_v39 = vld [vmem:[%s7754_s8 + $0xac] ss:$28 sps:$4 sm:$0xff]  }
 0x209   :  { %3973 = vmatpush1.bf16.msra.mxu0 %v5547_v40  ;;  %v5520_v40 = vld [vmem:[%s7754_s8 + $0xa8] ss:$28 sps:$4 sm:$0xff]  }
 0x20a   :  { %3974 = vmatprep.subr.bf16.mxu0 %v5555_v41  ;;  %v5528_v41 = vld [vmem:[%s7754_s8 + $0xe4] ss:$28 sps:$4 sm:$0xff]  }
 0x20d   :  { %3975 = vmatpush1.bf16.msra.mxu0 %v5553_v42  ;;  %v5526_v42 = vld [vmem:[%s7754_s8 + $0xe0] ss:$28 sps:$4 sm:$0xff]  }
 0x20e   :  { %3976 = vmatprep.subr.bf16.mxu0 %v5561_v43  ;;  %v5534_v43 = vld [vmem:[%s7754_s8 + $0x11c] ss:$28 sps:$4 sm:$0xff]  }
 0x211   :  { %3977 = vmatpush1.bf16.msra.mxu0 %v5559_v44  ;;  %v5532_v44 = vld [vmem:[%s7754_s8 + $0x118] ss:$28 sps:$4 sm:$0xff]  }
 0x212   :  { %3978 = vmatprep.subr.bf16.mxu0 %v5567_v45  ;;  %v5540_v45 = vld [vmem:[%s7754_s8 + $0x154] ss:$28 sps:$4 sm:$0xff]  }
 0x215   :  { %3979 = vmatpush1.bf16.msra.mxu0 %v5565_v46  ;;  %v5538_v46 = vld [vmem:[%s7754_s8 + $0x150] ss:$28 sps:$4 sm:$0xff]  }
 0x216   :  { %3980 = vmatprep.subr.bf16.mxu0 %v5573_v47  ;;  %v5546_v47 = vld [vmem:[%s7754_s8 + $0x18c] ss:$28 sps:$4 sm:$0xff]  }
 0x219   :  { %3981 = vmatpush1.bf16.msra.mxu0 %v5571_v48  ;;  %v5544_v48 = vld [vmem:[%s7754_s8 + $0x188] ss:$28 sps:$4 sm:$0xff]  }
 0x21a   :  { %3982 = vmatprep.subr.bf16.mxu0 %v5579_v49  ;;  %v5552_v49 = vld [vmem:[%s7754_s8 + $0x1c4] ss:$28 sps:$4 sm:$0xff]  }
 0x21d   :  { %3983 = vmatpush1.bf16.msra.mxu0 %v5577_v50  ;;  %v5550_v50 = vld [vmem:[%s7754_s8 + $0x1c0] ss:$28 sps:$4 sm:$0xff]  }
 0x21e   :  { %3984 = vmatprep.subr.bf16.mxu0 %v5585_v51  ;;  %v5558_v51 = vld [vmem:[%s7754_s8 + $0x1fc] ss:$28 sps:$4 sm:$0xff]  }
 0x221   :  { %3985 = vmatpush1.bf16.msra.mxu0 %v5583_v52  ;;  %v5556_v52 = vld [vmem:[%s7754_s8 + $0x1f8] ss:$28 sps:$4 sm:$0xff]  }
 0x2bf   :  { %v2095_v56 = vpop.f32.mrb[4].mxu0 }
 0x2c0   :  { %v5000_v57 = vadd.f32 %v2095_v56, %v1691_v54  ;;  %v2097_v58 = vpop.f32.mrb[5].mxu0  ;;  %v5568_v56 = vld [vmem:[%s7754_s8 + $0x268] ss:$28 sps:$4 sm:$0xff]  }
 0x2c1   :  { %v5001_v59 = vadd.f32 %v2097_v58, %v1695_v55  ;;  %v2099_v60 = vpop.f32.mrb[6].mxu0  ;;  %v5574_v58 = vld [vmem:[%s7754_s8 + $0x2a0] ss:$28 sps:$4 sm:$0xff]  }
 0x2c2   :  { %4349 = vst [vmem:[#allocation4] sm:$0xff] %v5000_v57  ;;  %v5002_v61 = vadd.f32 %v2099_v60, %v1691_v54  ;;  %v2101_v62 = vpop.f32.mrb[7].mxu0  ;;  %v5562_v54 = vld [vmem:[%s7754_s8 + $0x230] ss:$28 sps:$4 sm:$0xff]   ;;  %v5580_v60 = vld [vmem:[%s7754_s8 + $0x2d8] ss:$28 sps:$4 sm:$0xff]  }
 0x2c3   :  { %v2104_v63 = vmul.f32 0.5, %v5001_v59  ;;  %4351 = vst [vmem:[#allocation6] sm:$0xff] %v5001_v59  ;;  %v5003_v3 = vadd.f32 %v2101_v62, %v1695_v55  ;;  %v5570_v55 = vld [vmem:[%s7754_s8 + $0x26c] ss:$28 sps:$4 sm:$0xff]   ;;  %v5582_v59 = vld [vmem:[%s7754_s8 + $0x2dc] ss:$28 sps:$4 sm:$0xff]  }
 0x2c4   :  { %4350 = vst [vmem:[#allocation4 + $0x8] sm:$0xff] %v5002_v61  ;;  %v5591_v62 = vld [vmem:[%s7754_s8 + $0x31c] ss:$28 sps:$4 sm:$0xff]  }
 0x2c5   :  { %v2106_v6 = vmul.f32 1.442695, %v2104_v63  ;;  %v2105_v7 = vmul.f32 0.5, %v5003_v3  ;;  %4352 = vst [vmem:[#allocation6 + $0x8] sm:$0xff] %v5003_v3  ;;  %v5586_v63 = vld [vmem:[%s7754_s8 + $0x310] ss:$28 sps:$4 sm:$0xff]   ;;  %3986 = vmatprep.subr.bf16.mxu0 %v5591_v62 }
 0x2c6   :  { %v5589_v3 = vld [vmem:[%s7754_s8 + $0x318] ss:$28 sps:$4 sm:$0xff]  }
 0x2c7   :  { %5822 = vpow2.f32 %v2106_v6  ;;  %v2108_v8 = vmul.f32 1.442695, %v2105_v7  ;;  %3987 = vmatpush1.bf16.msra.mxu0 %v5589_v3  ;;  %v5594_v6 = vld [vmem:[%s7754_s8 + $0x34c] ss:$28 sps:$4 sm:$0xff]   ;;  %v5597_v7 = vld [vmem:[%s7754_s8 + $0x354] ss:$28 sps:$4 sm:$0xff]  }
 0x2c8   :  { %3988 = vmatprep.subr.bf16.mxu0 %v5597_v7 }
 0x2c9   :  { %5824 = vpow2.f32 %v2108_v8  ;;  %v5592_v8 = vld [vmem:[%s7754_s8 + $0x348] ss:$28 sps:$4 sm:$0xff]  }
 0x2d1   :  { %v5823_v10 = vpop.eup %5822 }
 0x2d2   :  { %v2110_v12 = vmul.f32 %v5823_v10, %v62_v9  ;;  %v5595_v9 = vld [vmem:[%s7754_s8 + $0x350] ss:$28 sps:$4 sm:$0xff]   ;;  %v5600_v10 = vld [vmem:[%s7754_s8 + $0x384] ss:$28 sps:$4 sm:$0xff]  }
 0x2d3   :  { %v5825_v13 = vpop.eup %5824  ;;  %3989 = vmatpush1.bf16.msra.mxu0 %v5595_v9  ;;  %v5643_v9 = vld [vmem:[%s7754_s8 + $0x510] ss:$28 sps:$4 sm:$0xff]  }
 0x2d4   :  { %v2111_v14 = vmul.f32 %v5825_v13, %v63_v11  ;;  %v2112_v15 = vadd.f32 %v5000_v57, %v2110_v12  ;;  %v5576_v57 = vld [vmem:[%s7754_s8 + $0x2a4] ss:$28 sps:$4 sm:$0xff]   ;;  %v5603_v11 = vld [vmem:[%s7754_s8 + $0x38c] ss:$28 sps:$4 sm:$0xff]  }
 0x2d5   :  { %4001 = vmatprep.subr.bf16.mxu0 %v5603_v11  ;;  %v7183_v12 = vld [vmem:[%s7753_s7] sm:$0xf] }
 0x2d6   :  { %v2113_v16 = vadd.f32 %v5002_v61, %v2111_v14  ;;  %v5588_v61 = vld [vmem:[%s7754_s8 + $0x314] ss:$28 sps:$4 sm:$0xff]   ;;  %v2152_v13 = vrot.slane %v7183_v12, %v6772_v1  ;;  %v2156_v14 = vrot.slane %v7183_v12, %v6781_v4 }
 0x2d8   :  { %v2114_v18 = vpack.c.bf16 %v2113_v16, %v2112_v15 }
 0x2da   :  { %2362 = vmatmul.mubr.bf16.vlgmr.msra.gmra.mrb[4].mxu1 %v2114_v18 }
 0x2db   :  { %2373 = vmatpush1.bf16.msra.mxu1 %v5478_v17  ;;  %2404 = vmatprep.mubr.bf16.mxu1 %v5952_v23  ;;  %v5487_v23 = vld [vmem:[%s7752_s6 + $0x68] ss:$16 sps:$4 sm:$0xff]  }
 0x2dc   :  { %2374 = vmatprep.subr.bf16.mxu1 %v5483_v19 }
 0x2df   :  { %2375 = vmatpush1.bf16.msra.mxu1 %v5481_v20 }
 0x2e0   :  { %2376 = vmatprep.subr.bf16.mxu1 %v5486_v21 }
 0x2e3   :  { %2377 = vmatpush1.bf16.msra.mxu1 %v5484_v22 }
 0x2e4   :  { %2378 = vmatprep.subr.bf16.mxu1 %v5489_v24 }
 0x2e7   :  { %2379 = vmatpush1.bf16.msra.mxu1 %v5487_v23 }
 0x2e8   :  { %2380 = vmatprep.subr.bf16.mxu1 %v5492_v25 }
 0x2eb   :  { %2381 = vmatpush1.bf16.msra.mxu1 %v5490_v26 }
 0x2ec   :  { %2382 = vmatprep.subr.bf16.mxu1 %v5495_v27 }
 0x2ef   :  { %2383 = vmatpush1.bf16.msra.mxu1 %v5493_v28 }
 0x2f0   :  { %2384 = vmatprep.subr.bf16.mxu1 %v5498_v29  ;;  %v5598_v29 = vld [vmem:[%s7754_s8 + $0x380] ss:$28 sps:$4 sm:$0xff]  }
 0x2f3   :  { %2385 = vmatpush1.bf16.msra.mxu1 %v5496_v30  ;;  %v5601_v30 = vld [vmem:[%s7754_s8 + $0x388] ss:$28 sps:$4 sm:$0xff]  }
 0x2f4   :  { %2386 = vmatprep.subr.bf16.mxu1 %v5501_v31  ;;  %v5606_v31 = vld [vmem:[%s7754_s8 + $0x3bc] ss:$28 sps:$4 sm:$0xff]  }
 0x2f7   :  { %2387 = vmatpush1.bf16.msra.mxu1 %v5499_v32  ;;  %v5609_v32 = vld [vmem:[%s7754_s8 + $0x3c4] ss:$28 sps:$4 sm:$0xff]  }
 0x2f8   :  { %3872 = vmatprep.subr.bf16.mxu1 %v5504_v33  ;;  %v5604_v33 = vld [vmem:[%s7754_s8 + $0x3b8] ss:$28 sps:$4 sm:$0xff]  }
 0x2fa   :  { %2405 = vmatmul.mubr.bf16.vlgmr.msra.gmra.mrb[8].mxu1 %v2114_v18 }
 0x2fb   :  { %3873 = vmatpush1.bf16.msra.mxu1 %v5502_v34  ;;  %v5607_v34 = vld [vmem:[%s7754_s8 + $0x3c0] ss:$28 sps:$4 sm:$0xff]  }
 0x2fc   :  { %3874 = vmatprep.subr.bf16.mxu1 %v5510_v35  ;;  %v5612_v35 = vld [vmem:[%s7754_s8 + $0x3f4] ss:$28 sps:$4 sm:$0xff]  }
 0x2ff   :  { %3875 = vmatpush1.bf16.msra.mxu1 %v5508_v36  ;;  %v5615_v36 = vld [vmem:[%s7754_s8 + $0x3fc] ss:$28 sps:$4 sm:$0xff]  }
 0x300   :  { %3876 = vmatprep.subr.bf16.mxu1 %v5516_v37  ;;  %v5610_v37 = vld [vmem:[%s7754_s8 + $0x3f0] ss:$28 sps:$4 sm:$0xff]  }
 0x303   :  { %3877 = vmatpush1.bf16.msra.mxu1 %v5514_v38  ;;  %v5613_v38 = vld [vmem:[%s7754_s8 + $0x3f8] ss:$28 sps:$4 sm:$0xff]  }
 0x304   :  { %3878 = vmatprep.subr.bf16.mxu1 %v5522_v39  ;;  %v5618_v39 = vld [vmem:[%s7754_s8 + $0x42c] ss:$28 sps:$4 sm:$0xff]  }
 0x307   :  { %3879 = vmatpush1.bf16.msra.mxu1 %v5520_v40  ;;  %v5621_v40 = vld [vmem:[%s7754_s8 + $0x434] ss:$28 sps:$4 sm:$0xff]  }
 0x308   :  { %3880 = vmatprep.subr.bf16.mxu1 %v5528_v41  ;;  %v5616_v41 = vld [vmem:[%s7754_s8 + $0x428] ss:$28 sps:$4 sm:$0xff]  }
 0x30b   :  { %3881 = vmatpush1.bf16.msra.mxu1 %v5526_v42  ;;  %v5619_v42 = vld [vmem:[%s7754_s8 + $0x430] ss:$28 sps:$4 sm:$0xff]  }
 0x30c   :  { %3882 = vmatprep.subr.bf16.mxu1 %v5534_v43  ;;  %v5624_v43 = vld [vmem:[%s7754_s8 + $0x464] ss:$28 sps:$4 sm:$0xff]  }
 0x30f   :  { %3883 = vmatpush1.bf16.msra.mxu1 %v5532_v44  ;;  %v5627_v44 = vld [vmem:[%s7754_s8 + $0x46c] ss:$28 sps:$4 sm:$0xff]  }
 0x310   :  { %3884 = vmatprep.subr.bf16.mxu1 %v5540_v45  ;;  %v5622_v45 = vld [vmem:[%s7754_s8 + $0x460] ss:$28 sps:$4 sm:$0xff]  }
 0x313   :  { %3885 = vmatpush1.bf16.msra.mxu1 %v5538_v46  ;;  %v5625_v46 = vld [vmem:[%s7754_s8 + $0x468] ss:$28 sps:$4 sm:$0xff]  }
 0x314   :  { %3886 = vmatprep.subr.bf16.mxu1 %v5546_v47  ;;  %v5630_v47 = vld [vmem:[%s7754_s8 + $0x49c] ss:$28 sps:$4 sm:$0xff]  }
 0x317   :  { %3887 = vmatpush1.bf16.msra.mxu1 %v5544_v48  ;;  %v5633_v48 = vld [vmem:[%s7754_s8 + $0x4a4] ss:$28 sps:$4 sm:$0xff]  }
 0x318   :  { %3888 = vmatprep.subr.bf16.mxu1 %v5552_v49  ;;  %v5628_v49 = vld [vmem:[%s7754_s8 + $0x498] ss:$28 sps:$4 sm:$0xff]  }
 0x31b   :  { %3889 = vmatpush1.bf16.msra.mxu1 %v5550_v50  ;;  %v5631_v50 = vld [vmem:[%s7754_s8 + $0x4a0] ss:$28 sps:$4 sm:$0xff]  }
 0x31c   :  { %3890 = vmatprep.subr.bf16.mxu1 %v5558_v51  ;;  %v2160_v51 = vrot.slane %v7183_v12, %v6775_v2 }
 0x31f   :  { %3891 = vmatpush1.bf16.msra.mxu1 %v5556_v52  ;;  %v5636_v52 = vld [vmem:[%s7754_s8 + $0x4d4] ss:$28 sps:$4 sm:$0xff]  }
 0x320   :  { %3892 = vmatprep.subr.bf16.mxu1 %v5564_v53  ;;  %v5639_v53 = vld [vmem:[%s7754_s8 + $0x4dc] ss:$28 sps:$4 sm:$0xff]  }
 0x323   :  { %3893 = vmatpush1.bf16.msra.mxu1 %v5562_v54  ;;  %v2164_v54 = vrot.slane %v7183_v12, %v6784_v5  ;;  %v5648_v12 = vld [vmem:[%s7754_s8 + $0x544] ss:$28 sps:$4 sm:$0xff]  }
 0x324   :  { %3894 = vmatprep.subr.bf16.mxu1 %v5570_v55 }
 0x327   :  { %3895 = vmatpush1.bf16.msra.mxu1 %v5568_v56  ;;  %v5634_v56 = vld [vmem:[%s7754_s8 + $0x4d0] ss:$28 sps:$4 sm:$0xff]  }
 0x328   :  { %3896 = vmatprep.subr.bf16.mxu1 %v5576_v57  ;;  %v5637_v57 = vld [vmem:[%s7754_s8 + $0x4d8] ss:$28 sps:$4 sm:$0xff]  }
 0x32b   :  { %3897 = vmatpush1.bf16.msra.mxu1 %v5574_v58 }
 0x32c   :  { %3898 = vmatprep.subr.bf16.mxu1 %v5582_v59 }
 0x32f   :  { %3899 = vmatpush1.bf16.msra.mxu1 %v5580_v60  ;;  %v5642_v60 = vld [vmem:[%s7754_s8 + $0x50c] ss:$28 sps:$4 sm:$0xff]  }
 0x330   :  { %3900 = vmatprep.subr.bf16.mxu1 %v5588_v61  ;;  %v5645_v61 = vld [vmem:[%s7754_s8 + $0x514] ss:$28 sps:$4 sm:$0xff]  }
 0x333   :  { %3901 = vmatpush1.bf16.msra.mxu1 %v5586_v63 }
 0x334   :  { %3902 = vmatprep.subr.bf16.mxu1 %v5594_v6 }
 0x337   :  { %3903 = vmatpush1.bf16.msra.mxu1 %v5592_v8  ;;  %v5640_v8 = vld [vmem:[%s7754_s8 + $0x508] ss:$28 sps:$4 sm:$0xff]  }
 0x338   :  { %3915 = vmatprep.subr.bf16.mxu1 %v5600_v10 }
 0x3ad   :  { %v2363_v15 = vpop.f32.mrb[4].mxu1 }
 0x3ae   :  { %v2364_v16 = vadd.f32 %v2363_v15, %v2152_v13  ;;  %v2365_v17 = vpop.f32.mrb[5].mxu1 }
 0x3af   :  { %v2366_v18 = vadd.f32 %v2365_v17, %v2156_v14  ;;  %v2367_v19 = vpop.f32.mrb[6].mxu1 }
 0x3b0   :  { %v2368_v20 = vadd.f32 %v2367_v19, %v2152_v13  ;;  %v2369_v21 = vpop.f32.mrb[7].mxu1  ;;  %v2415_v24 = vmax.f32 %v2364_v16, 0.0  ;;  %v5651_v13 = vld [vmem:[%s7754_s8 + $0x54c] ss:$28 sps:$4 sm:$0xff]  }
 0x3b1   :  { %v2370_v22 = vadd.f32 %v2369_v21, %v2156_v14  ;;  %v2416_v25 = vmax.f32 %v2366_v18, 0.0  ;;  %v5646_v18 = vld [vmem:[%s7754_s8 + $0x540] ss:$28 sps:$4 sm:$0xff]   ;;  %v5649_v19 = vld [vmem:[%s7754_s8 + $0x548] ss:$28 sps:$4 sm:$0xff]  }
 0x3b2   :  { %v2419_v23 = vmax.f32 %v2368_v20, 0.0  ;;  %v5654_v20 = vld [vmem:[%s7754_s8 + $0x57c] ss:$28 sps:$4 sm:$0xff]   ;;  %v5657_v21 = vld [vmem:[%s7754_s8 + $0x584] ss:$28 sps:$4 sm:$0xff]  }
 0x3b3   :  { %v2420_v26 = vmax.f32 %v2370_v22, 0.0  ;;  %v5652_v22 = vld [vmem:[%s7754_s8 + $0x578] ss:$28 sps:$4 sm:$0xff]  }
 0x3b4   :  { %v7189_v27 = vpack.c.bf16 %v2419_v23, %v2415_v24  ;;  %v5655_v24 = vld [vmem:[%s7754_s8 + $0x580] ss:$28 sps:$4 sm:$0xff]   ;;  %v5660_v23 = vld [vmem:[%s7754_s8 + $0x5b4] ss:$28 sps:$4 sm:$0xff]  }
 0x3b5   :  { %v7191_v28 = vpack.c.bf16 %v2420_v26, %v2416_v25  ;;  %v5663_v25 = vld [vmem:[%s7754_s8 + $0x5bc] ss:$28 sps:$4 sm:$0xff]   ;;  %v5658_v26 = vld [vmem:[%s7754_s8 + $0x5b0] ss:$28 sps:$4 sm:$0xff]  }
 0x3b7   :  { %3904 = vmatprep.mubr.bf16.mxu1 %v7191_v28  ;;  %3990 = vmatprep.mubr.bf16.mxu0 %v7191_v28 }
 0x3b8   :  { %3905 = vmatmul.mubr.bf16.vlgmr.msra.gmra.mrb[12].mxu1 %v7189_v27  ;;  %3991 = vmatmul.mubr.bf16.vlgmr.msra.gmra.mrb[8].mxu0 %v7189_v27 }
 0x3b9   :  { %3916 = vmatpush1.bf16.msra.mxu1 %v5598_v29  ;;  %4002 = vmatpush1.bf16.msra.mxu0 %v5601_v30  ;;  %v5661_v29 = vld [vmem:[%s7754_s8 + $0x5b8] ss:$28 sps:$4 sm:$0xff]   ;;  %v5666_v30 = vld [vmem:[%s7754_s8 + $0x5ec] ss:$28 sps:$4 sm:$0xff]  }
 0x3ba   :  { %3917 = vmatprep.subr.bf16.mxu1 %v5606_v31  ;;  %4003 = vmatprep.subr.bf16.mxu0 %v5609_v32  ;;  %v5669_v31 = vld [vmem:[%s7754_s8 + $0x5f4] ss:$28 sps:$4 sm:$0xff]   ;;  %v5664_v32 = vld [vmem:[%s7754_s8 + $0x5e8] ss:$28 sps:$4 sm:$0xff]  }
 0x3bd   :  { %3918 = vmatpush1.bf16.msra.mxu1 %v5604_v33  ;;  %4004 = vmatpush1.bf16.msra.mxu0 %v5607_v34  ;;  %v5667_v33 = vld [vmem:[%s7754_s8 + $0x5f0] ss:$28 sps:$4 sm:$0xff]   ;;  %v5672_v34 = vld [vmem:[%s7754_s8 + $0x624] ss:$28 sps:$4 sm:$0xff]  }
 0x3be   :  { %3919 = vmatprep.subr.bf16.mxu1 %v5612_v35  ;;  %4005 = vmatprep.subr.bf16.mxu0 %v5615_v36  ;;  %v5675_v35 = vld [vmem:[%s7754_s8 + $0x62c] ss:$28 sps:$4 sm:$0xff]   ;;  %v5670_v36 = vld [vmem:[%s7754_s8 + $0x620] ss:$28 sps:$4 sm:$0xff]  }
 0x3c1   :  { %3920 = vmatpush1.bf16.msra.mxu1 %v5610_v37  ;;  %4006 = vmatpush1.bf16.msra.mxu0 %v5613_v38  ;;  %v5673_v37 = vld [vmem:[%s7754_s8 + $0x628] ss:$28 sps:$4 sm:$0xff]   ;;  %v5678_v38 = vld [vmem:[%s7754_s8 + $0x65c] ss:$28 sps:$4 sm:$0xff]  }
 0x3c2   :  { %3921 = vmatprep.subr.bf16.mxu1 %v5618_v39  ;;  %4007 = vmatprep.subr.bf16.mxu0 %v5621_v40  ;;  %v5681_v39 = vld [vmem:[%s7754_s8 + $0x664] ss:$28 sps:$4 sm:$0xff]   ;;  %v5676_v40 = vld [vmem:[%s7754_s8 + $0x658] ss:$28 sps:$4 sm:$0xff]  }
 0x3c5   :  { %3922 = vmatpush1.bf16.msra.mxu1 %v5616_v41  ;;  %4008 = vmatpush1.bf16.msra.mxu0 %v5619_v42  ;;  %v5679_v41 = vld [vmem:[%s7754_s8 + $0x660] ss:$28 sps:$4 sm:$0xff]   ;;  %v5684_v42 = vld [vmem:[%s7754_s8 + $0x694] ss:$28 sps:$4 sm:$0xff]  }
 0x3c6   :  { %3923 = vmatprep.subr.bf16.mxu1 %v5624_v43  ;;  %4009 = vmatprep.subr.bf16.mxu0 %v5627_v44  ;;  %v5687_v43 = vld [vmem:[%s7754_s8 + $0x69c] ss:$28 sps:$4 sm:$0xff]   ;;  %v5682_v44 = vld [vmem:[%s7754_s8 + $0x690] ss:$28 sps:$4 sm:$0xff]  }
 0x3c9   :  { %3924 = vmatpush1.bf16.msra.mxu1 %v5622_v45  ;;  %4010 = vmatpush1.bf16.msra.mxu0 %v5625_v46  ;;  %v5685_v45 = vld [vmem:[%s7754_s8 + $0x698] ss:$28 sps:$4 sm:$0xff]   ;;  %v5690_v46 = vld [vmem:[%s7754_s8 + $0x6cc] ss:$28 sps:$4 sm:$0xff]  }
 0x3ca   :  { %3925 = vmatprep.subr.bf16.mxu1 %v5630_v47  ;;  %4011 = vmatprep.subr.bf16.mxu0 %v5633_v48  ;;  %v5693_v47 = vld [vmem:[%s7754_s8 + $0x6d4] ss:$28 sps:$4 sm:$0xff]   ;;  %v5688_v48 = vld [vmem:[%s7754_s8 + $0x6c8] ss:$28 sps:$4 sm:$0xff]  }
 0x3cd   :  { %v2406_v55 = vpop.f32.mrb[8].mxu1  ;;  %3926 = vmatpush1.bf16.msra.mxu1 %v5628_v49  ;;  %4012 = vmatpush1.bf16.msra.mxu0 %v5631_v50  ;;  %v5691_v49 = vld [vmem:[%s7754_s8 + $0x6d0] ss:$28 sps:$4 sm:$0xff]  }
 0x3ce   :  { %v2407_v58 = vadd.f32 %v2406_v55, %v2160_v51  ;;  %v2408_v59 = vpop.f32.mrb[9].mxu1  ;;  %3927 = vmatprep.subr.bf16.mxu1 %v5636_v52  ;;  %4013 = vmatprep.subr.bf16.mxu0 %v5639_v53  ;;  %v5696_v50 = vld [vmem:[%s7754_s8 + $0x14] ss:$28 sps:$4 sm:$0xff]  }
 0x3cf   :  { %v2409_v62 = vadd.f32 %v2408_v59, %v2164_v54  ;;  %v2410_v63 = vpop.f32.mrb[10].mxu1  ;;  %v5694_v52 = vld [vmem:[%s7754_s8 + $0x10] ss:$28 sps:$4 sm:$0xff]   ;;  %v5698_v53 = vld [vmem:[%s7754_s8 + $0x18] ss:$28 sps:$4 sm:$0xff]  }
 0x3d0   :  { %v2411_v3 = vadd.f32 %v2410_v63, %v2160_v51  ;;  %v2412_v6 = vpop.f32.mrb[11].mxu1  ;;  %v2417_v10 = vmax.f32 %v2407_v58, 0.0  ;;  %v5697_v51 = vld [vmem:[%s7754_s8 + $0x1d8] ss:$28 sps:$4 sm:$0xff]   ;;  %v5702_v55 = vld [vmem:[%s7754_s8 + $0x210] ss:$28 sps:$4 sm:$0xff]  }
 0x3d1   :  { %v2413_v7 = vadd.f32 %v2412_v6, %v2164_v54  ;;  %3928 = vmatpush1.bf16.msra.mxu1 %v5634_v56  ;;  %4014 = vmatpush1.bf16.msra.mxu0 %v5637_v57  ;;  %v2418_v14 = vmax.f32 %v2409_v62, 0.0  ;;  %v5701_v54 = vld [vmem:[%s7754_s8 + $0x4c] ss:$28 sps:$4 sm:$0xff]   ;;  %v5706_v58 = vld [vmem:[%s7754_s8 + $0x84] ss:$28 sps:$4 sm:$0xff]  }
 0x3d2   :  { %v2421_v11 = vmax.f32 %v2411_v3, 0.0  ;;  %3929 = vmatprep.subr.bf16.mxu1 %v5642_v60  ;;  %4015 = vmatprep.subr.bf16.mxu0 %v5645_v61  ;;  %v5699_v56 = vld [vmem:[%s7754_s8 + $0x48] ss:$28 sps:$4 sm:$0xff]   ;;  %v5703_v57 = vld [vmem:[%s7754_s8 + $0x50] ss:$28 sps:$4 sm:$0xff]  }
 0x3d3   :  { %v2422_v15 = vmax.f32 %v2413_v7, 0.0  ;;  %v5707_v59 = vld [vmem:[%s7754_s8 + $0x248] ss:$28 sps:$4 sm:$0xff]   ;;  %v5704_v60 = vld [vmem:[%s7754_s8 + $0x80] ss:$28 sps:$4 sm:$0xff]  }
 0x3d4   :  { %v7297_v16 = vpack.c.bf16 %v2421_v11, %v2417_v10  ;;  %v5711_v61 = vld [vmem:[%s7754_s8 + $0xbc] ss:$28 sps:$4 sm:$0xff]   ;;  %v5716_v6 = vld [vmem:[%s7754_s8 + $0xf4] ss:$28 sps:$4 sm:$0xff]   ;;  %v5721_v10 = vld [vmem:[%s7754_s8 + $0x12c] ss:$28 sps:$4 sm:$0xff]  }
 0x3d5   :  { %v7299_v17 = vpack.c.bf16 %v2422_v15, %v2418_v14  ;;  %3930 = vmatpush1.bf16.msra.mxu1 %v5640_v8  ;;  %4016 = vmatpush1.bf16.msra.mxu0 %v5643_v9  ;;  %v5712_v62 = vld [vmem:[%s7754_s8 + $0x280] ss:$28 sps:$4 sm:$0xff]   ;;  %v5709_v63 = vld [vmem:[%s7754_s8 + $0xb8] ss:$28 sps:$4 sm:$0xff]   ;;  %v5714_v8 = vld [vmem:[%s7754_s8 + $0xf0] ss:$28 sps:$4 sm:$0xff]  }
 0x3d6   :  { %3931 = vmatprep.subr.bf16.mxu1 %v5648_v12  ;;  %4017 = vmatprep.subr.bf16.mxu0 %v5651_v13  ;;  %v5713_v3 = vld [vmem:[%s7754_s8 + $0xc0] ss:$28 sps:$4 sm:$0xff]   ;;  %v5717_v7 = vld [vmem:[%s7754_s8 + $0x2b8] ss:$28 sps:$4 sm:$0xff]   ;;  %v5722_v11 = vld [vmem:[%s7754_s8 + $0x2f0] ss:$28 sps:$4 sm:$0xff]  }
 0x3d7   :  { %3947 = vmatprep.mubr.bf16.mxu1 %v7299_v17  ;;  %4033 = vmatprep.mubr.bf16.mxu0 %v7299_v17  ;;  %v5718_v9 = vld [vmem:[%s7754_s8 + $0xf8] ss:$28 sps:$4 sm:$0xff]   ;;  %v5719_v12 = vld [vmem:[%s7754_s8 + $0x128] ss:$28 sps:$4 sm:$0xff]   ;;  %v5723_v13 = vld [vmem:[%s7754_s8 + $0x130] ss:$28 sps:$4 sm:$0xff]  }
 0x3d8   :  { %v5726_v14 = vld [vmem:[%s7754_s8 + $0x164] ss:$28 sps:$4 sm:$0xff]  }
 0x3d9   :  { %3932 = vmatpush1.bf16.msra.mxu1 %v5646_v18  ;;  %4018 = vmatpush1.bf16.msra.mxu0 %v5649_v19  ;;  %v5727_v15 = vld [vmem:[%s7754_s8 + $0x328] ss:$28 sps:$4 sm:$0xff]   ;;  %v5724_v18 = vld [vmem:[%s7754_s8 + $0x160] ss:$28 sps:$4 sm:$0xff]  }
 0x3da   :  { %3933 = vmatprep.subr.bf16.mxu1 %v5654_v20  ;;  %4019 = vmatprep.subr.bf16.mxu0 %v5657_v21  ;;  %v5728_v19 = vld [vmem:[%s7754_s8 + $0x168] ss:$28 sps:$4 sm:$0xff]   ;;  %v5731_v20 = vld [vmem:[%s7754_s8 + $0x19c] ss:$28 sps:$4 sm:$0xff]  }
 0x3db   :  { %v5732_v21 = vld [vmem:[%s7754_s8 + $0x360] ss:$28 sps:$4 sm:$0xff]  }
 0x3dd   :  { %3934 = vmatpush1.bf16.msra.mxu1 %v5652_v22  ;;  %4020 = vmatpush1.bf16.msra.mxu0 %v5655_v24  ;;  %v5729_v22 = vld [vmem:[%s7754_s8 + $0x198] ss:$28 sps:$4 sm:$0xff]   ;;  %v5733_v24 = vld [vmem:[%s7754_s8 + $0x1a0] ss:$28 sps:$4 sm:$0xff]  }
 0x3de   :  { %3935 = vmatprep.subr.bf16.mxu1 %v5660_v23  ;;  %4021 = vmatprep.subr.bf16.mxu0 %v5663_v25  ;;  %v5736_v23 = vld [vmem:[%s7754_s8 + $0x1d4] ss:$28 sps:$4 sm:$0xff]  }
 0x3df   :  { %v5737_v25 = vld [vmem:[%s7754_s8 + $0x558] ss:$28 sps:$4 sm:$0xff]  }
 0x3e1   :  { %3936 = vmatpush1.bf16.msra.mxu1 %v5658_v26  ;;  %4022 = vmatpush1.bf16.msra.mxu0 %v5661_v29  ;;  %v5734_v26 = vld [vmem:[%s7754_s8 + $0x1d0] ss:$28 sps:$4 sm:$0xff]   ;;  %v5738_v29 = vld [vmem:[%s7754_s8 + $0x398] ss:$28 sps:$4 sm:$0xff]  }
 0x3e2   :  { %3937 = vmatprep.subr.bf16.mxu1 %v5666_v30  ;;  %4023 = vmatprep.subr.bf16.mxu0 %v5669_v31  ;;  %v5741_v30 = vld [vmem:[%s7754_s8 + $0x20c] ss:$28 sps:$4 sm:$0xff]  }
 0x3e3   :  { %v5742_v31 = vld [vmem:[%s7754_s8 + $0x590] ss:$28 sps:$4 sm:$0xff]  }
 0x3e5   :  { %3938 = vmatpush1.bf16.msra.mxu1 %v5664_v32  ;;  %4024 = vmatpush1.bf16.msra.mxu0 %v5667_v33  ;;  %v5739_v32 = vld [vmem:[%s7754_s8 + $0x208] ss:$28 sps:$4 sm:$0xff]   ;;  %v5743_v33 = vld [vmem:[%s7754_s8 + $0x3d0] ss:$28 sps:$4 sm:$0xff]  }
 0x3e6   :  { %3939 = vmatprep.subr.bf16.mxu1 %v5672_v34  ;;  %4025 = vmatprep.subr.bf16.mxu0 %v5675_v35  ;;  %v5746_v34 = vld [vmem:[%s7754_s8 + $0x244] ss:$28 sps:$4 sm:$0xff]  }
 0x3e7   :  { %v5747_v35 = vld [vmem:[%s7754_s8 + $0x5c8] ss:$28 sps:$4 sm:$0xff]  }
 0x3e9   :  { %3940 = vmatpush1.bf16.msra.mxu1 %v5670_v36  ;;  %4026 = vmatpush1.bf16.msra.mxu0 %v5673_v37  ;;  %v5744_v36 = vld [vmem:[%s7754_s8 + $0x240] ss:$28 sps:$4 sm:$0xff]   ;;  %v5748_v37 = vld [vmem:[%s7754_s8 + $0x408] ss:$28 sps:$4 sm:$0xff]  }
 0x3ea   :  { %3941 = vmatprep.subr.bf16.mxu1 %v5678_v38  ;;  %4027 = vmatprep.subr.bf16.mxu0 %v5681_v39  ;;  %v5751_v38 = vld [vmem:[%s7754_s8 + $0x27c] ss:$28 sps:$4 sm:$0xff]  }
 0x3eb   :  { %v5752_v39 = vld [vmem:[%s7754_s8 + $0x600] ss:$28 sps:$4 sm:$0xff]  }
 0x3ed   :  { %3942 = vmatpush1.bf16.msra.mxu1 %v5676_v40  ;;  %4028 = vmatpush1.bf16.msra.mxu0 %v5679_v41  ;;  %v5749_v40 = vld [vmem:[%s7754_s8 + $0x278] ss:$28 sps:$4 sm:$0xff]   ;;  %v5753_v41 = vld [vmem:[%s7754_s8 + $0x440] ss:$28 sps:$4 sm:$0xff]  }
 0x3ee   :  { %3943 = vmatprep.subr.bf16.mxu1 %v5684_v42  ;;  %4029 = vmatprep.subr.bf16.mxu0 %v5687_v43  ;;  %v5756_v42 = vld [vmem:[%s7754_s8 + $0x2b4] ss:$28 sps:$4 sm:$0xff]  }
 0x3ef   :  { %v5757_v43 = vld [vmem:[%s7754_s8 + $0x638] ss:$28 sps:$4 sm:$0xff]  }
 0x3f1   :  { %3944 = vmatpush1.bf16.msra.mxu1 %v5682_v44  ;;  %4030 = vmatpush1.bf16.msra.mxu0 %v5685_v45  ;;  %v5754_v44 = vld [vmem:[%s7754_s8 + $0x2b0] ss:$28 sps:$4 sm:$0xff]   ;;  %v5758_v45 = vld [vmem:[%s7754_s8 + $0x478] ss:$28 sps:$4 sm:$0xff]  }
 0x3f2   :  { %3945 = vmatprep.subr.bf16.mxu1 %v5690_v46  ;;  %4031 = vmatprep.subr.bf16.mxu0 %v5693_v47  ;;  %v5761_v46 = vld [vmem:[%s7754_s8 + $0x2ec] ss:$28 sps:$4 sm:$0xff]  }
 0x3f3   :  { %v5762_v47 = vld [vmem:[%s7754_s8 + $0x670] ss:$28 sps:$4 sm:$0xff]  }
 0x3f5   :  { %3946 = vmatpush1.bf16.msra.mxu1 %v5688_v48  ;;  %4032 = vmatpush1.bf16.msra.mxu0 %v5691_v49  ;;  %v5759_v48 = vld [vmem:[%s7754_s8 + $0x2e8] ss:$28 sps:$4 sm:$0xff]   ;;  %v5763_v49 = vld [vmem:[%s7754_s8 + $0x4b0] ss:$28 sps:$4 sm:$0xff]  }
 0x3f6   :  { %4044 = vmatprep.subr.bf16.mxu1 %v5696_v50  ;;  %4948 = vmatprep.subr.bf16.mxu0 %v5697_v51  ;;  %v5766_v50 = vld [vmem:[%s7754_s8 + $0x324] ss:$28 sps:$4 sm:$0xff]  }
 0x3f7   :  { %v5767_v51 = vld [vmem:[%s7754_s8 + $0x6a8] ss:$28 sps:$4 sm:$0xff]  }
 0x3f8   :  { %3948 = vmatmul.mubr.bf16.vlgmr.msra.gmra.mrb[12].mxu1 %v7297_v16  ;;  %4034 = vmatmul.mubr.bf16.vlgmr.msra.gmra.mrb[8].mxu0 %v7297_v16 }
 0x3f9   :  { %4045 = vmatpush1.bf16.msra.mxu1 %v5694_v52  ;;  %4076 = vmatprep.mubr.bf16.mxu1 %v7191_v28  ;;  %v5764_v52 = vld [vmem:[%s7754_s8 + $0x320] ss:$28 sps:$4 sm:$0xff]  }
 0x3fa   :  { %4949 = vmatpush3.bf16.msra.mxu0 %v5698_v53  ;;  %4162 = vmatprep.mubr.bf16.mxu0 %v7191_v28  ;;  %v5708_v28 = vld [vmem:[%s7754_s8 + $0x88] ss:$28 sps:$4 sm:$0xff]  }
 0x3fb   :  { %4046 = vmatprep.subr.bf16.mxu1 %v5701_v54  ;;  %4950 = vmatprep.subr.bf16.mxu0 %v5702_v55  ;;  %v5768_v53 = vld [vmem:[%s7754_s8 + $0x4e8] ss:$28 sps:$4 sm:$0xff]   ;;  %v5771_v54 = vld [vmem:[%s7754_s8 + $0x35c] ss:$28 sps:$4 sm:$0xff]  }
 0x3fc   :  { %v5772_v55 = vld [vmem:[%s7754_s8 + $0x6e0] ss:$28 sps:$4 sm:$0xff]  }
 0x3fd   :  { %4047 = vmatpush1.bf16.msra.mxu1 %v5699_v56  ;;  %v5769_v56 = vld [vmem:[%s7754_s8 + $0x358] ss:$28 sps:$4 sm:$0xff]  }
 0x3fe   :  { %4951 = vmatpush3.bf16.msra.mxu0 %v5703_v57  ;;  %4048 = vmatprep.subr.bf16.mxu1 %v5706_v58  ;;  %v5773_v57 = vld [vmem:[%s7754_s8 + $0x520] ss:$28 sps:$4 sm:$0xff]   ;;  %v5776_v58 = vld [vmem:[%s7754_s8 + $0x394] ss:$28 sps:$4 sm:$0xff]  }
 0x3ff   :  { %4952 = vmatprep.subr.bf16.mxu0 %v5707_v59  ;;  %v5774_v59 = vld [vmem:[%s7754_s8 + $0x390] ss:$28 sps:$4 sm:$0xff]  }
 0x401   :  { %4049 = vmatpush1.bf16.msra.mxu1 %v5704_v60  ;;  %v5779_v60 = vld [vmem:[%s7754_s8 + $0x3cc] ss:$28 sps:$4 sm:$0xff]  }
 0x402   :  { %4953 = vmatpush3.bf16.msra.mxu0 %v5708_v28  ;;  %4050 = vmatprep.subr.bf16.mxu1 %v5711_v61  ;;  %v5777_v28 = vld [vmem:[%s7754_s8 + $0x3c8] ss:$28 sps:$4 sm:$0xff]  }
 0x403   :  { %4954 = vmatprep.subr.bf16.mxu0 %v5712_v62  ;;  %v5782_v61 = vld [vmem:[%s7754_s8 + $0x404] ss:$28 sps:$4 sm:$0xff]  }
 0x404   :  { %v5780_v62 = vld [vmem:[%s7754_s8 + $0x400] ss:$28 sps:$4 sm:$0xff]  }
 0x405   :  { %4051 = vmatpush1.bf16.msra.mxu1 %v5709_v63  ;;  %v5788_v63 = vld [vmem:[%s7754_s8 + $0x474] ss:$28 sps:$4 sm:$0xff]  }
 0x406   :  { %4955 = vmatpush3.bf16.msra.mxu0 %v5713_v3  ;;  %4052 = vmatprep.subr.bf16.mxu1 %v5716_v6  ;;  %v5786_v3 = vld [vmem:[%s7754_s8 + $0x470] ss:$28 sps:$4 sm:$0xff]  }
 0x407   :  { %4956 = vmatprep.subr.bf16.mxu0 %v5717_v7  ;;  %v5791_v6 = vld [vmem:[%s7754_s8 + $0x4ac] ss:$28 sps:$4 sm:$0xff]  }
 0x408   :  { %v5789_v7 = vld [vmem:[%s7754_s8 + $0x4a8] ss:$28 sps:$4 sm:$0xff]  }
 0x409   :  { %4053 = vmatpush1.bf16.msra.mxu1 %v5714_v8  ;;  %v5794_v8 = vld [vmem:[%s7754_s8 + $0x4e4] ss:$28 sps:$4 sm:$0xff]  }
 0x40a   :  { %4957 = vmatpush3.bf16.msra.mxu0 %v5718_v9  ;;  %4054 = vmatprep.subr.bf16.mxu1 %v5721_v10  ;;  %v5792_v9 = vld [vmem:[%s7754_s8 + $0x4e0] ss:$28 sps:$4 sm:$0xff]  }
 0x40b   :  { %4958 = vmatprep.subr.bf16.mxu0 %v5722_v11  ;;  %v5797_v10 = vld [vmem:[%s7754_s8 + $0x51c] ss:$28 sps:$4 sm:$0xff]  }
 0x40c   :  { %v5795_v11 = vld [vmem:[%s7754_s8 + $0x518] ss:$28 sps:$4 sm:$0xff]  }
 0x40d   :  { %4055 = vmatpush1.bf16.msra.mxu1 %v5719_v12  ;;  %v5800_v12 = vld [vmem:[%s7754_s8 + $0x554] ss:$28 sps:$4 sm:$0xff]  }
 0x40e   :  { %4959 = vmatpush3.bf16.msra.mxu0 %v5723_v13  ;;  %4056 = vmatprep.subr.bf16.mxu1 %v5726_v14  ;;  %v5798_v13 = vld [vmem:[%s7754_s8 + $0x550] ss:$28 sps:$4 sm:$0xff]  }
 0x40f   :  { %4960 = vmatprep.subr.bf16.mxu0 %v5727_v15  ;;  %v5803_v14 = vld [vmem:[%s7754_s8 + $0x58c] ss:$28 sps:$4 sm:$0xff]  }
 0x410   :  { %v5801_v15 = vld [vmem:[%s7754_s8 + $0x588] ss:$28 sps:$4 sm:$0xff]  }
 0x411   :  { %4057 = vmatpush1.bf16.msra.mxu1 %v5724_v18  ;;  %v5806_v18 = vld [vmem:[%s7754_s8 + $0x5c4] ss:$28 sps:$4 sm:$0xff]  }
 0x412   :  { %4961 = vmatpush3.bf16.msra.mxu0 %v5728_v19  ;;  %4058 = vmatprep.subr.bf16.mxu1 %v5731_v20  ;;  %v5804_v19 = vld [vmem:[%s7754_s8 + $0x5c0] ss:$28 sps:$4 sm:$0xff]  }
 0x413   :  { %4962 = vmatprep.subr.bf16.mxu0 %v5732_v21  ;;  %v5809_v20 = vld [vmem:[%s7754_s8 + $0x5fc] ss:$28 sps:$4 sm:$0xff]  }
 0x414   :  { %v5807_v21 = vld [vmem:[%s7754_s8 + $0x5f8] ss:$28 sps:$4 sm:$0xff]  }
 0x415   :  { %4059 = vmatpush1.bf16.msra.mxu1 %v5729_v22  ;;  %v5812_v22 = vld [vmem:[%s7754_s8 + $0x634] ss:$28 sps:$4 sm:$0xff]  }
 0x416   :  { %4963 = vmatpush3.bf16.msra.mxu0 %v5733_v24  ;;  %4060 = vmatprep.subr.bf16.mxu1 %v5736_v23  ;;  %v5810_v24 = vld [vmem:[%s7754_s8 + $0x630] ss:$28 sps:$4 sm:$0xff]  }
 0x417   :  { %4970 = vmatprep.subr.bf16.mxu0 %v5737_v25  ;;  %v5815_v23 = vld [vmem:[%s7754_s8 + $0x66c] ss:$28 sps:$4 sm:$0xff]  }
 0x418   :  { %v5813_v25 = vld [vmem:[%s7754_s8 + $0x668] ss:$28 sps:$4 sm:$0xff]  }
 0x419   :  { %4163 = vmatmul.mubr.bf16.vlgmr.msra.gmra.mrb[12].mxu0 %v7189_v27  ;;  %4061 = vmatpush1.bf16.msra.mxu1 %v5734_v26  ;;  %v5818_v26 = vld [vmem:[%s7754_s8 + $0x6a4] ss:$28 sps:$4 sm:$0xff]  }
 0x41a   :  { %4971 = vmatpush3.bf16.msra.mxu0 %v5738_v29  ;;  %4203 = vmatprep.mubr.bf16.mxu0 %v7299_v17  ;;  %v5816_v29 = vld [vmem:[%s7754_s8 + $0x6a0] ss:$28 sps:$4 sm:$0xff]  }
 0x41b   :  { %4062 = vmatprep.subr.bf16.mxu1 %v5741_v30  ;;  %4972 = vmatprep.subr.bf16.mxu0 %v5742_v31  ;;  %v5821_v30 = vld [vmem:[%s7754_s8 + $0x6dc] ss:$28 sps:$4 sm:$0xff]  }
 0x41c   :  { %v5819_v31 = vld [vmem:[%s7754_s8 + $0x6d8] ss:$28 sps:$4 sm:$0xff]  }
 0x41d   :  { %4063 = vmatpush1.bf16.msra.mxu1 %v5739_v32  ;;  %v7694_v32 = vld [vmem:[%s7755_s9] sm:$0x7f] }
 0x41e   :  { %4973 = vmatpush3.bf16.msra.mxu0 %v5743_v33  ;;  %4064 = vmatprep.subr.bf16.mxu1 %v5746_v34  ;;  %v2688_v33 = vrot.slane %v7694_v32, %v6772_v1  ;;  %v2696_v34 = vrot.slane %v7694_v32, %v6775_v2 }
 0x41f   :  { %4974 = vmatprep.subr.bf16.mxu0 %v5747_v35  ;;  %v2692_v35 = vrot.slane %v7694_v32, %v6781_v4 }
 0x421   :  { %4065 = vmatpush1.bf16.msra.mxu1 %v5744_v36  ;;  %v2700_v36 = vrot.slane %v7694_v32, %v6784_v5 }
 0x422   :  { %4975 = vmatpush3.bf16.msra.mxu0 %v5748_v37  ;;  %4066 = vmatprep.subr.bf16.mxu1 %v5751_v38 }
 0x423   :  { %4976 = vmatprep.subr.bf16.mxu0 %v5752_v39 }
 0x425   :  { %4067 = vmatpush1.bf16.msra.mxu1 %v5749_v40 }
 0x426   :  { %4977 = vmatpush3.bf16.msra.mxu0 %v5753_v41  ;;  %4068 = vmatprep.subr.bf16.mxu1 %v5756_v42 }
 0x427   :  { %4978 = vmatprep.subr.bf16.mxu0 %v5757_v43 }
 0x429   :  { %4069 = vmatpush1.bf16.msra.mxu1 %v5754_v44 }
 0x42a   :  { %4979 = vmatpush3.bf16.msra.mxu0 %v5758_v45  ;;  %4070 = vmatprep.subr.bf16.mxu1 %v5761_v46 }
 0x42b   :  { %4980 = vmatprep.subr.bf16.mxu0 %v5762_v47 }
 0x42d   :  { %4071 = vmatpush1.bf16.msra.mxu1 %v5759_v48 }
 0x42e   :  { %4981 = vmatpush3.bf16.msra.mxu0 %v5763_v49  ;;  %4072 = vmatprep.subr.bf16.mxu1 %v5766_v50 }
 0x42f   :  { %4982 = vmatprep.subr.bf16.mxu0 %v5767_v51 }
 0x431   :  { %4073 = vmatpush1.bf16.msra.mxu1 %v5764_v52 }
 0x432   :  { %4983 = vmatpush3.bf16.msra.mxu0 %v5768_v53  ;;  %4074 = vmatprep.subr.bf16.mxu1 %v5771_v54 }
 0x433   :  { %4984 = vmatprep.subr.bf16.mxu0 %v5772_v55 }
 0x435   :  { %4075 = vmatpush1.bf16.msra.mxu1 %v5769_v56 }
 0x436   :  { %4985 = vmatpush3.bf16.msra.mxu0 %v5773_v57  ;;  %4087 = vmatprep.subr.bf16.mxu1 %v5776_v58 }
 0x438   :  { %4077 = vmatmul.mubr.bf16.vlgmr.msra.gmra.mrb[16].mxu1 %v7189_v27  ;;  %v5785_v27 = vld [vmem:[%s7754_s8 + $0x43c] ss:$28 sps:$4 sm:$0xff]  }
 0x439   :  { %4204 = vmatmul.mubr.bf16.vlgmr.msra.gmra.mrb[16].mxu0 %v7297_v16  ;;  %4088 = vmatpush1.bf16.msra.mxu1 %v5774_v59 }
 0x43a   :  { %4119 = vmatprep.mubr.bf16.mxu1 %v7299_v17  ;;  %4089 = vmatprep.subr.bf16.mxu1 %v5779_v60  ;;  %v5783_v17 = vld [vmem:[%s7754_s8 + $0x438] ss:$28 sps:$4 sm:$0xff]   ;;  %s5953_s8 = smov [#allocation4]  }
 0x43b   :  { %s4370_s9 = sshll.u32 %s5953_s8, 4  ;;  %s4371_s9 = int_to_ptr.vmem [resolvable:$true] %s4370_s9 }
 0x43c   :  { %s5882_s6 = scalar_lea.vmem %s4371_s9, 256  ;;  %p5887_p1 = scmp.lt.s32.totalorder %s4371_s9, %s4371_s9 }
 0x43d   :  { %4090 = vmatpush1.bf16.msra.mxu1 %v5777_v28  ;;  %p5883_p0 = scmp.ne.s32.totalorder %s4371_s9, %s5882_s6  ;;  %p5888_p2 = scmp.lt.s32.totalorder %s5882_s6, %s5882_s6 }
 0x43e   :  { %4091 = vmatprep.subr.bf16.mxu1 %v5782_v61 }
 0x43f   :  { %p5889_p3 = por %p5888_p2, %p5887_p1 }
 0x441   :  { %4092 = vmatpush1.bf16.msra.mxu1 %v5780_v62  ;;  %p5890_p4 = pnand %p5889_p3, %p5883_p0 }
 0x442   :  { %4093 = vmatprep.subr.bf16.mxu1 %v5785_v27 }
 0x445   :  { %4094 = vmatpush1.bf16.msra.mxu1 %v5783_v17 }
 0x446   :  { %4095 = vmatprep.subr.bf16.mxu1 %v5788_v63 }
 0x449   :  { %4096 = vmatpush1.bf16.msra.mxu1 %v5786_v3 }
 0x44a   :  { %4097 = vmatprep.subr.bf16.mxu1 %v5791_v6 }
 0x44d   :  { %4098 = vmatpush1.bf16.msra.mxu1 %v5789_v7 }
 0x44e   :  { %4099 = vmatprep.subr.bf16.mxu1 %v5794_v8 }
 0x451   :  { %4100 = vmatpush1.bf16.msra.mxu1 %v5792_v9 }
 0x452   :  { %4101 = vmatprep.subr.bf16.mxu1 %v5797_v10 }
 0x455   :  { %4102 = vmatpush1.bf16.msra.mxu1 %v5795_v11 }
 0x456   :  { %4103 = vmatprep.subr.bf16.mxu1 %v5800_v12 }
 0x459   :  { %4104 = vmatpush1.bf16.msra.mxu1 %v5798_v13 }
 0x45a   :  { %4105 = vmatprep.subr.bf16.mxu1 %v5803_v14 }
 0x45d   :  { %4106 = vmatpush1.bf16.msra.mxu1 %v5801_v15 }
 0x45e   :  { %4107 = vmatprep.subr.bf16.mxu1 %v5806_v18 }
 0x461   :  { %4108 = vmatpush1.bf16.msra.mxu1 %v5804_v19 }
 0x462   :  { %4109 = vmatprep.subr.bf16.mxu1 %v5809_v20 }
 0x465   :  { %4110 = vmatpush1.bf16.msra.mxu1 %v5807_v21 }
 0x466   :  { %4111 = vmatprep.subr.bf16.mxu1 %v5812_v22 }
 0x469   :  { %4112 = vmatpush1.bf16.msra.mxu1 %v5810_v24 }
 0x46a   :  { %4113 = vmatprep.subr.bf16.mxu1 %v5815_v23 }
 0x46d   :  { %4114 = vmatpush1.bf16.msra.mxu1 %v5813_v25 }
 0x46e   :  { %4115 = vmatprep.subr.bf16.mxu1 %v5818_v26 }
 0x471   :  { %4116 = vmatpush1.bf16.msra.mxu1 %v5816_v29 }
 0x472   :  { %4117 = vmatprep.subr.bf16.mxu1 %v5821_v30 }
 0x475   :  { %4118 = vmatpush1.bf16.msra.mxu1 %v5819_v31 }
 0x478   :  { %4120 = vmatmul.mubr.bf16.vlgmr.msra.gmra.mrb[16].mxu1 %v7297_v16 }
 0x4cb   :  { %v3949_v37 = vpop.f32.mrb[12].mxu1  ;;  %v4035_v38 = vpop.f32.mrb[8].mxu0 }
 0x4cc   :  { %v5004_v16 = vadd.f32 %v3949_v37, %v2688_v33  ;;  %v5008_v39 = vadd.f32 %v4035_v38, %v2696_v34  ;;  %v3951_v40 = vpop.f32.mrb[13].mxu1  ;;  %v4037_v41 = vpop.f32.mrb[9].mxu0 }
 0x4cd   :  { %v5005_v42 = vadd.f32 %v3951_v40, %v2692_v35  ;;  %v5009_v43 = vadd.f32 %v4037_v41, %v2700_v36  ;;  %v3953_v44 = vpop.f32.mrb[14].mxu1  ;;  %v4039_v45 = vpop.f32.mrb[10].mxu0 }
 0x4ce   :  { %v4918_v1 = vmul.f32 -1.442695, %v5004_v16  ;;  %v4920_v46 = vmul.f32 -1.442695, %v5008_v39  ;;  %v5006_v47 = vadd.f32 %v3953_v44, %v2688_v33  ;;  %v5010_v2 = vadd.f32 %v4039_v45, %v2696_v34  ;;  %v3955_v48 = vpop.f32.mrb[15].mxu1  ;;  %v4041_v49 = vpop.f32.mrb[11].mxu0 }
 0x4cf   :  { %v4919_v4 = vmul.f32 -1.442695, %v5005_v42  ;;  %v4921_v50 = vmul.f32 -1.442695, %v5009_v43  ;;  %v5007_v51 = vadd.f32 %v3955_v48, %v2692_v35  ;;  %v5011_v5 = vadd.f32 %v4041_v49, %v2700_v36 }
 0x4d0   :  { %5826 = vpow2.f32 %v4918_v1  ;;  %v4925_v52 = vmul.f32 -1.442695, %v5006_v47  ;;  %v4927_v53 = vmul.f32 -1.442695, %v5010_v2 }
 0x4d1   :  { %5828 = vpow2.f32 %v4920_v46  ;;  %v4926_v54 = vmul.f32 -1.442695, %v5007_v51  ;;  %v4928_v55 = vmul.f32 -1.442695, %v5011_v5 }
 0x4d2   :  { %5830 = vpow2.f32 %v4919_v4 }
 0x4d3   :  { %5832 = vpow2.f32 %v4921_v50 }
 0x4d4   :  { %5834 = vpow2.f32 %v4925_v52 }
 0x4d5   :  { %5836 = vpow2.f32 %v4927_v53 }
 0x4d6   :  { %5838 = vpow2.f32 %v4926_v54 }
 0x4d7   :  { %5840 = vpow2.f32 %v4928_v55 }
 0x4da   :  { %v5827_v56 = vpop.eup %5826 }
 0x4db   :  { %v5829_v57 = vpop.eup %5828  ;;  %v4254_v58 = vadd.f32 1.0, %v5827_v56 }
 0x4dc   :  { %v5831_v59 = vpop.eup %5830  ;;  %v4256_v60 = vadd.f32 1.0, %v5829_v57 }
 0x4dd   :  { %v5833_v28 = vpop.eup %5832  ;;  %5842 = vrcp.f32 %v4254_v58  ;;  %v4255_v61 = vadd.f32 1.0, %v5831_v59 }
 0x4de   :  { %v5835_v62 = vpop.eup %5834  ;;  %5844 = vrcp.f32 %v4256_v60  ;;  %v4257_v27 = vadd.f32 1.0, %v5833_v28 }
 0x4df   :  { %v5837_v17 = vpop.eup %5836  ;;  %5846 = vrcp.f32 %v4255_v61  ;;  %v4261_v63 = vadd.f32 1.0, %v5835_v62 }
 0x4e0   :  { %v5839_v3 = vpop.eup %5838  ;;  %5848 = vrcp.f32 %v4257_v27  ;;  %v4263_v6 = vadd.f32 1.0, %v5837_v17 }
 0x4e1   :  { %v5841_v7 = vpop.eup %5840  ;;  %5850 = vrcp.f32 %v4261_v63  ;;  %v4262_v8 = vadd.f32 1.0, %v5839_v3 }
 0x4e2   :  { %5852 = vrcp.f32 %v4263_v6  ;;  %v4264_v9 = vadd.f32 1.0, %v5841_v7 }
 0x4e3   :  { %5854 = vrcp.f32 %v4262_v8 }
 0x4e4   :  { %5856 = vrcp.f32 %v4264_v9 }
 0x4e7   :  { %v5843_v10 = vpop.eup %5842 }
 0x4e8   :  { %v5845_v11 = vpop.eup %5844 }
 0x4e9   :  { %v5847_v12 = vpop.eup %5846 }
 0x4ea   :  { %v5849_v13 = vpop.eup %5848  ;;  %v4940_v14 = vpack.c.bf16 %v5847_v12, %v5843_v10 }
 0x4eb   :  { %v5851_v15 = vpop.eup %5850  ;;  %v4941_v18 = vpack.c.bf16 %v5849_v13, %v5845_v11 }
 0x4ec   :  { %v5853_v19 = vpop.eup %5852  ;;  %4340 = vst [vmem:[#allocation2] sm:$0xff] %v4940_v14  ;;  %v4964_v20 = vpop.f32.mrb[12].mxu0 }
 0x4ed   :  { %v5855_v21 = vpop.eup %5854  ;;  %4341 = vst [vmem:[#allocation2 + $0x8] sm:$0xff] %v4941_v18  ;;  %v4965_v22 = vpop.f32.mrb[13].mxu0 }
 0x4ee   :  { %v5857_v24 = vpop.eup %5856  ;;  %v4944_v23 = vpack.c.bf16 %v5855_v21, %v5851_v15  ;;  %v4966_v25 = vadd.f32 %v4965_v22, %v4964_v20  ;;  %v4967_v26 = vpop.f32.mrb[14].mxu0 }
 0x4ef   :  { %v4945_v29 = vpack.c.bf16 %v5857_v24, %v5853_v19  ;;  %v4968_v30 = vpop.f32.mrb[15].mxu0 }
 0x4f0   :  { %4345 = vst [vmem:[#allocation2 + $0x1c] sm:$0xff] %v4944_v23  ;;  %v4969_v31 = vadd.f32 %v4968_v30, %v4967_v26 }
 0x4f1   :  { %5893 = shalt.err (!%p5890_p4)
}
 0x4f2   :  { %s5894_s15 = scalar_lea.hbm %s7757_s11, 256 }
 0x4f3   :  { %p5895_p5 = scmp.ne.s32.totalorder %s7757_s11, %s5894_s15  ;;  %p5898_p6 = scmp.lt.u32.totalorder %s5894_s15, %s7757_s11 }
 0x4f5   :  { %p5900_p7 = pnand %p5898_p6, %p5895_p5 }
 0x4f7   :  { %5903 = shalt.err (!%p5900_p7)
}
 0x4f8   :  { %s5954_s18 = smov 128   ;;  %s5955_s19 = smov 8   ;;  %4346 = vst [vmem:[#allocation2 + $0x24] sm:$0xff] %v4945_v29 }
 0x4f9   :  { %4376 = dma.vmem_to_hbm [thread:$0]  %s4371_s9, 256, %s7757_s11, [#allocation5], %s5954_s18, %s5954_s18, %s5955_s19  }
 0x4fa   :  { %s5956_s22 = smov [#allocation6]  }
 0x4fb   :  { %s4382_s3 = sshll.u32 %s5956_s22, 4  ;;  %s4383_s3 = int_to_ptr.vmem [resolvable:$true] %s4382_s3 }
 0x4fc   :  { %s5904_s23 = scalar_lea.vmem %s4383_s3, 256  ;;  %p5909_p9 = scmp.lt.s32.totalorder %s4383_s3, %s4383_s3 }
 0x4fd   :  { %p5905_p8 = scmp.ne.s32.totalorder %s4383_s3, %s5904_s23  ;;  %p5910_p10 = scmp.lt.s32.totalorder %s5904_s23, %s5904_s23 }
 0x4ff   :  { %p5911_p11 = por %p5910_p10, %p5909_p9 }
 0x501   :  { %p5912_p12 = pnand %p5911_p11, %p5905_p8 }
 0x503   :  { %5915 = shalt.err (!%p5912_p12)
}
 0x504   :  { %s5916_s1 = scalar_lea.hbm %s7758_s12, 256 }
 0x505   :  { %p5917_p13 = scmp.ne.s32.totalorder %s7758_s12, %s5916_s1  ;;  %p5920_p0 = scmp.lt.u32.totalorder %s5916_s1, %s7758_s12 }
 0x507   :  { %p5922_p1 = pnand %p5920_p0, %p5917_p13 }
 0x509   :  { %5925 = shalt.err (!%p5922_p1)
}
 0x50a   :  { %4388 = dma.vmem_to_hbm [thread:$0]  %s4383_s3, 256, %s7758_s12, [#allocation5], %s5954_s18, %s5954_s18, %s5955_s19   ;;  %v2711_v33 = vsub.s32 6, %v6769_v0  ;;  %vm4343_vm1 = vcmask 125952   ;;  %v2703_v51 = vsub.s32 4, %v6769_v0  ;;  %v2707_v5 = vsub.s32 5, %v6769_v0 }
 0x50b   :  { %s5957_s12 = smov [#allocation2]  }
 0x50c   :  { %v2712_v34 = vrot.slane %v7694_v32, %v2711_v33  ;;  %v4986_v35 = vpop.f32.mrb[16].mxu0  ;;  %v2704_v52 = vrot.slane %v7694_v32, %v2703_v51  ;;  %v2708_v53 = vrot.slane %v7694_v32, %v2707_v5  ;;  %s4358_s28 = sshll.u32 %s5957_s12, 4  ;;  %s4359_s28 = int_to_ptr.vmem [resolvable:$true] %s4358_s28 }
 0x50d   :  { %v4987_v36 = vpop.f32.mrb[17].mxu0  ;;  %s5926_s29 = scalar_lea.vmem %s4359_s28, 896  ;;  %p5931_p3 = scmp.lt.s32.totalorder %s4359_s28, %s4359_s28 }
 0x50e   :  { %v4165_v37 = vadd.f32 %v4966_v25, %v2712_v34  ;;  %v4988_v38 = vadd.f32 %v4987_v36, %v4986_v35  ;;  %v4989_v16 = vpop.f32.mrb[18].mxu0  ;;  %v4168_v40 = vadd.f32 %v4969_v31, %v2712_v34  ;;  %p5927_p2 = scmp.ne.s32.totalorder %s4359_s28, %s5926_s29  ;;  %p5932_p4 = scmp.lt.s32.totalorder %s5926_s29, %s5926_s29 }
 0x50f   :  { %v4990_v39 = vpop.f32.mrb[19].mxu0 }
 0x510   :  { %v4206_v41 = vadd.f32 %v4988_v38, %v4165_v37  ;;  %v4991_v42 = vadd.f32 %v4990_v39, %v4989_v16  ;;  %p5933_p5 = por %p5932_p4, %p5931_p3 }
 0x512   :  { %v4924_v43 = vmul.f32 -1.442695, %v4206_v41  ;;  %v4209_v44 = vadd.f32 %v4991_v42, %v4168_v40  ;;  %p5934_p6 = pnand %p5933_p5, %p5927_p2 }
 0x514   :  { %5858 = vpow2.f32 %v4924_v43  ;;  %v4931_v45 = vmul.f32 -1.442695, %v4209_v44 }
 0x516   :  { %5860 = vpow2.f32 %v4931_v45 }
 0x51e   :  { %v5859_v1 = vpop.eup %5858 }
 0x51f   :  { %v4260_v46 = vadd.f32 1.0, %v5859_v1 }
 0x520   :  { %v5861_v47 = vpop.eup %5860 }
 0x521   :  { %5862 = vrcp.f32 %v4260_v46  ;;  %v4267_v2 = vadd.f32 1.0, %v5861_v47 }
 0x523   :  { %5864 = vrcp.f32 %v4267_v2 }
 0x52b   :  { %v5863_v48 = vpop.eup %5862 }
 0x52c   :  { %v4943_v49 = vpack.c.bf16 %v5863_v48, %v5863_v48 }
 0x52d   :  { %v5865_v4 = vpop.eup %5864 }
 0x52e   :  { %4344 = vst.msk [vmem:[#allocation2 + $0x18] sm:$0xf] %vm4343_vm1, %v4943_v49  ;;  %v4947_v50 = vpack.c.bf16 %v5865_v4, %v5865_v4 }
 0x530   :  { %4348 = vst.msk [vmem:[#allocation2 + $0x34] sm:$0xf] %vm4343_vm1, %v4947_v50 }
 0x54b   :  { %v4121_v54 = vpop.f32.mrb[16].mxu1 }
 0x54c   :  { %v5012_v55 = vadd.f32 %v4121_v54, %v2704_v52  ;;  %v4123_v56 = vpop.f32.mrb[17].mxu1 }
 0x54d   :  { %v5013_v57 = vadd.f32 %v4123_v56, %v2708_v53  ;;  %v4125_v58 = vpop.f32.mrb[18].mxu1 }
 0x54e   :  { %v4922_v59 = vmul.f32 -1.442695, %v5012_v55  ;;  %v5014_v60 = vadd.f32 %v4125_v58, %v2704_v52  ;;  %v4127_v28 = vpop.f32.mrb[19].mxu1 }
 0x54f   :  { %v4923_v61 = vmul.f32 -1.442695, %v5013_v57  ;;  %v5015_v62 = vadd.f32 %v4127_v28, %v2708_v53 }
 0x550   :  { %5866 = vpow2.f32 %v4922_v59  ;;  %v4929_v27 = vmul.f32 -1.442695, %v5014_v60 }
 0x551   :  { %5868 = vpow2.f32 %v4923_v61  ;;  %v4930_v17 = vmul.f32 -1.442695, %v5015_v62 }
 0x552   :  { %5870 = vpow2.f32 %v4929_v27 }
 0x553   :  { %5872 = vpow2.f32 %v4930_v17 }
 0x55a   :  { %v5867_v0 = vpop.eup %5866 }
 0x55b   :  { %v5869_v63 = vpop.eup %5868  ;;  %v4258_v3 = vadd.f32 1.0, %v5867_v0 }
 0x55c   :  { %v5871_v32 = vpop.eup %5870  ;;  %v4259_v6 = vadd.f32 1.0, %v5869_v63 }
 0x55d   :  { %v5873_v7 = vpop.eup %5872  ;;  %5874 = vrcp.f32 %v4258_v3  ;;  %v4265_v8 = vadd.f32 1.0, %v5871_v32 }
 0x55e   :  { %5876 = vrcp.f32 %v4259_v6  ;;  %v4266_v9 = vadd.f32 1.0, %v5873_v7 }
 0x55f   :  { %5878 = vrcp.f32 %v4265_v8 }
 0x560   :  { %5880 = vrcp.f32 %v4266_v9 }
 0x567   :  { %v5875_v10 = vpop.eup %5874 }
 0x568   :  { %v5877_v11 = vpop.eup %5876 }
 0x569   :  { %v5879_v12 = vpop.eup %5878  ;;  %v4942_v13 = vpack.c.bf16 %v5877_v11, %v5875_v10 }
 0x56a   :  { %v5881_v14 = vpop.eup %5880 }
 0x56b   :  { %4342 = vst [vmem:[#allocation2 + $0x10] sm:$0xff] %v4942_v13  ;;  %v4946_v15 = vpack.c.bf16 %v5881_v14, %v5879_v12 }
 0x56d   :  { %4347 = vst [vmem:[#allocation2 + $0x2c] sm:$0xff] %v4946_v15 }
 0x56e   :  { %5937 = shalt.err (!%p5934_p6)
}
 0x56f   :  { %s5938_s9 = scalar_lea.hbm %s7756_s10, 896 }
 0x570   :  { %p5939_p7 = scmp.ne.s32.totalorder %s7756_s10, %s5938_s9  ;;  %p5942_p8 = scmp.lt.u32.totalorder %s5938_s9, %s7756_s10 }
 0x572   :  { %p5944_p9 = pnand %p5942_p8, %p5939_p7 }
 0x574   :  { %5947 = shalt.err (!%p5944_p9)
}
 0x575   :  { %s5958_s16 = smov 448   ;;  %s5959_s17 = smov 28  }
 0x576   :  { %4364 = dma.vmem_to_hbm [thread:$0]  %s4359_s28, 896, %s7756_s10, [#allocation3], %s5958_s16, %s5958_s16, %s5959_s17  }
 0x577   :  { %5948 = dma.done.wait [#allocation3], 896  }
 0x578   :  { %5949 = vsyncadd [#allocation3], 4294966400 }
 0x579   :  { %5950 = dma.done.wait [#allocation5], 512  }
 0x57a   :  { %5951 = vsyncadd [#allocation5], 4294966784 }
 0x57b   :  { %4398 = vsyncpa [#allocation3], 1 }
 0x57c   :  { %4399 = vsyncpa [#allocation5], 1 }

</bundles_post_ra>
